<compile_context>
chip_gen: v5e
topology: v5e:2x2
jax: 0.10.0
libtpu: 0.0.40
codegen_flags: <defaults>
</compile_context>

<pallas_src>
import math

import jax
import jax.numpy as jnp
from jax import lax
from jax.experimental import pallas as pl
from jax.experimental.pallas import tpu as pltpu


def _make_kernel(num_layers, batch_chunk, hidden_dim, unroll):
    H = hidden_dim
    BC = batch_chunk
    U = unroll

    def kernel(*refs):
        # refs: n_tchunks(SMEM,(1,)i32), x_flat(Tp*BC,E) bf16, lengths(BC,1) i32,
        #       [w_ih_T(bf16), w_hh_T(bf16), bias(f32)] * L,
        #       fc_w_T(H,O) bf16, fc_b(1,O) f32, out(BC,O) f32,
        #       gx(Tp*BC,4H) f32 scratch, seqh(Tp*BC,H) bf16 scratch
        ns_ref = refs[0]
        x_ref = refs[1]
        len_ref = refs[2]
        idx = 3
        layer_refs = []
        for _ in range(num_layers):
            layer_refs.append(refs[idx:idx + 3])
            idx += 3
        wfc_ref = refs[idx]
        bfc_ref = refs[idx + 1]
        out_ref = refs[idx + 2]
        gx_ref = refs[idx + 3]
        seqh_ref = refs[idx + 4]

        n_tchunks = ns_ref[0]          # number of U-step time chunks to run
        lengths = len_ref[...]         # (BC, 1) int32

        h_last = None
        for l in range(num_layers):
            wih_ref, whh_ref, bias_ref = layer_refs[l]
            is_last = (l == num_layers - 1)

            # ---- Hoisted input projection: all timesteps in ONE matmul ----
            # For l>0, rows of seqh beyond the steps actually run hold stale
            # data; the corresponding gx rows are never read (loop bound).
            if l == 0:
                layer_in = x_ref[...]          # (Tp*BC, E) bf16
            else:
                layer_in = seqh_ref[...]       # (Tp*BC, H) bf16, no cast
            gx_ref[...] = (
                jnp.dot(layer_in, wih_ref[...],
                        preferred_element_type=jnp.float32)
                + bias_ref[...])               # fused b_ih+b_hh added once

            whh = whh_ref[...]                 # (H, 4H) bf16

            # ---- Recurrence: only h @ W_hh + gate math per step ----
            def chunk(ci, carry, _whh=whh, _is_last=is_last):
                h, c = carry                   # (BC, H) f32
                for u in range(U):             # bounded static unroll
                    t = ci * U + u
                    row = pl.multiple_of(t * BC, BC)
                    gates = (gx_ref[pl.ds(row, BC), :]
                             + jnp.dot(h.astype(jnp.bfloat16), _whh,
                                       preferred_element_type=jnp.float32))
                    # Columns pre-permuted in glue to [i, f, o, g]:
                    # one sigmoid over 3H lanes + one tanh over H lanes.
                    sig = jax.nn.sigmoid(gates[:, :3 * H])
                    g_g = jnp.tanh(gates[:, 3 * H:])
                    i_g = sig[:, :H]
                    f_g = sig[:, H:2 * H]
                    o_g = sig[:, 2 * H:]
                    c_new = f_g * c + i_g * g_g
                    h_new = o_g * jnp.tanh(c_new)
                    valid = lengths > t        # (BC,1) -> bcast over H
                    h = jnp.where(valid, h_new, h)
                    c = jnp.where(valid, c_new, c)
                    if not _is_last:
                        seqh_ref[pl.ds(row, BC), :] = h.astype(jnp.bfloat16)
                return (h, c)

            h0 = jnp.zeros((BC, H), jnp.float32)
            c0 = jnp.zeros((BC, H), jnp.float32)
            h_last, _ = lax.fori_loop(0, n_tchunks, chunk, (h0, c0))

        # fc(hidden[-1])
        out_ref[...] = (jnp.dot(h_last.astype(jnp.bfloat16), wfc_ref[...],
                                preferred_element_type=jnp.float32)
                        + bfc_ref[...])

    return kernel


def simple_nn_forward(text, text_lengths, params, *, unroll=4, batch_chunk=8):
    emb_table = params["embedding"]          # (V, E) f32
    B, T = text.shape
    E = emb_table.shape[1]
    H = params["lstm"][0]["w_hh_T"].shape[0]
    O = params["fc_w_T"].shape[1]
    L = len(params["lstm"])

    BC = batch_chunk                          # rows per grid step (sublane-aligned)
    Bp = ((B + BC - 1) // BC) * BC
    NBC = Bp // BC
    U = unroll
    Tp = ((T + U - 1) // U) * U               # pad time to a multiple of U

    # Gate-column permutation: PyTorch [i, f, g, o] -> kernel [i, f, o, g].
    def reorder(w):                           # last dim = 4H
        return jnp.concatenate(
            [w[..., :2 * H], w[..., 3 * H:4 * H], w[..., 2 * H:3 * H]], axis=-1)

    # Glue: embedding gather, time-major flat layout, batch/time padding.
    embedded = jnp.take(emb_table, text, axis=0)           # (B, T, E)
    x = jnp.transpose(embedded, (1, 0, 2))                 # (T, B, E)
    x = jnp.pad(x, ((0, Tp - T), (0, Bp - B), (0, 0)))     # (Tp, Bp, E)
    x = x.reshape(Tp, NBC, BC, E).transpose(1, 0, 2, 3)    # (NBC, Tp, BC, E)
    x_flat = x.reshape(NBC, Tp * BC, E).astype(jnp.bfloat16)

    lengths = jnp.pad(text_lengths.astype(jnp.int32), (0, Bp - B))
    lengths = lengths.reshape(NBC, BC, 1)

    # Dynamic loop bound: only run ceil(max_len / U) time chunks.
    max_len = jnp.minimum(jnp.max(text_lengths.astype(jnp.int32)), T)
    n_tchunks = jnp.reshape((max_len + U - 1) // U, (1,)).astype(jnp.int32)

    inputs = [x_flat, lengths]
    for lp in params["lstm"]:
        inputs += [reorder(lp["w_ih_T"]).astype(jnp.bfloat16),
                   reorder(lp["w_hh_T"]).astype(jnp.bfloat16),
                   reorder(lp["b_ih"] + lp["b_hh"]).astype(jnp.float32)]
    inputs += [params["fc_w_T"].astype(jnp.bfloat16),
               params["fc_b"].astype(jnp.float32)]

    def resident_spec(a):                     # grid-invariant full-array block
        nd = a.ndim
        return pl.BlockSpec(a.shape, lambda i, ns, _nd=nd: (0,) * _nd)

    in_specs = [
        pl.BlockSpec((None, Tp * BC, E), lambda i, ns: (i, 0, 0)),  # x chunk
        pl.BlockSpec((None, BC, 1), lambda i, ns: (i, 0, 0)),       # lengths
    ] + [resident_spec(a) for a in inputs[2:]]

    # VMEM scoped limit: ~3/4 of physical VMEM (≈48 MiB v7x, ≈96 MiB v5e/v6e),
    # capped at 100 MiB; fall back to 64 MiB if the query is unavailable.
    try:
        cap = pltpu.get_tpu_info().vmem_capacity_bytes
        vmem_limit = int(min(100 * 1024 * 1024, (cap * 3) // 4))
    except Exception:  # pragma: no cover
        vmem_limit = 64 * 1024 * 1024

    kernel = _make_kernel(L, BC, H, U)
    out = pl.pallas_call(
        kernel,
        out_shape=jax.ShapeDtypeStruct((Bp, O), jnp.float32),
        grid_spec=pltpu.PrefetchScalarGridSpec(
            num_scalar_prefetch=1,
            grid=(NBC,),
            in_specs=in_specs,
            out_specs=pl.BlockSpec((BC, O), lambda i, ns: (i, 0)),
            scratch_shapes=[pltpu.VMEM((Tp * BC, 4 * H), jnp.float32),   # gx
                            pltpu.VMEM((Tp * BC, H), jnp.bfloat16)]),    # seqh
        compiler_params=pltpu.CompilerParams(
            dimension_semantics=("parallel",),
            vmem_limit_bytes=vmem_limit),
    )(n_tchunks, *inputs)
    return out[:B]


def init_params(key, vocab_size, embedding_dim, hidden_dim, output_dim,
                num_layers):
    n_keys = 1 + 4 * num_layers + 2
    keys = list(jax.random.split(key, n_keys))
    k = iter(keys)
    scale = 1.0 / math.sqrt(hidden_dim)

    params = {
        "embedding": jax.random.normal(next(k), (vocab_size, embedding_dim),
                                       jnp.float32)
    }
    lstm = []
    for l in range(num_layers):
        in_dim = embedding_dim if l == 0 else hidden_dim
        w_ih = jax.random.uniform(next(k), (4 * hidden_dim, in_dim),
                                  jnp.float32, -scale, scale)
        w_hh = jax.random.uniform(next(k), (4 * hidden_dim, hidden_dim),
                                  jnp.float32, -scale, scale)
        b_ih = jax.random.uniform(next(k), (1, 4 * hidden_dim),
                                  jnp.float32, -scale, scale)
        b_hh = jax.random.uniform(next(k), (1, 4 * hidden_dim),
                                  jnp.float32, -scale, scale)
        lstm.append({"w_ih_T": w_ih.T, "w_hh_T": w_hh.T,
                     "b_ih": b_ih, "b_hh": b_hh})
    params["lstm"] = lstm
    fc_w = jax.random.uniform(next(k), (output_dim, hidden_dim),
                              jnp.float32, -scale, scale)
    fc_b = jax.random.uniform(next(k), (1, output_dim),
                              jnp.float32, -scale, scale)
    params["fc_w_T"] = fc_w.T
    params["fc_b"] = fc_b
    return params


if __name__ == "__main__":
    vocab_size, embedding_dim, hidden_dim, output_dim, num_layers = 100, 32, 32, 4, 2
    B, T = 2, 8

    root = jax.random.PRNGKey(0)
    k_params, k_text = jax.random.split(root)
    params = init_params(k_params, vocab_size, embedding_dim, hidden_dim,
                         output_dim, num_layers)

    text = jax.random.randint(k_text, (B, T), 0, vocab_size, dtype=jnp.int32)
    text_lengths = jnp.array([8, 5], dtype=jnp.int32)  # padded/variable lengths

    out = simple_nn_forward(text, text_lengths, params)
    out = jax.block_until_ready(out)
    assert out.shape == (B, output_dim)
    print("KERNEL_OK")
</pallas_src>

<mosaic_0001>
module attributes {stable_mosaic.version = 11 : i64} {
  func.func @kernel(%arg0: i32, %arg1: memref<1xi32, #tpu.memory_space<smem>>, %arg2: memref<1x64x32xbf16, #tpu.memory_space<vmem>>, %arg3: memref<1x8x1xi32, #tpu.memory_space<vmem>>, %arg4: memref<32x128xbf16, #tpu.memory_space<vmem>>, %arg5: memref<32x128xbf16, #tpu.memory_space<vmem>>, %arg6: memref<1x128xf32, #tpu.memory_space<vmem>>, %arg7: memref<32x128xbf16, #tpu.memory_space<vmem>>, %arg8: memref<32x128xbf16, #tpu.memory_space<vmem>>, %arg9: memref<1x128xf32, #tpu.memory_space<vmem>>, %arg10: memref<32x4xbf16, #tpu.memory_space<vmem>>, %arg11: memref<1x4xf32, #tpu.memory_space<vmem>>, %arg12: memref<8x4xf32, #tpu.memory_space<vmem>>, %arg13: memref<64x128xf32, #tpu.memory_space<vmem>>, %arg14: memref<64x32xbf16, #tpu.memory_space<vmem>>) attributes {dimension_semantics = [#tpu.dimension_semantics<parallel>], iteration_bounds = array<i64: 1>, scalar_prefetch = 1 : i64, scratch_operands = 2 : i64, tpu.core_type = #tpu.core_type<tc>, window_params = [{transform_indices = @transform_0, window_bounds = array<i64: 1, 64, 32>}, {transform_indices = @transform_1, window_bounds = array<i64: 1, 8, 1>}, {pipeline_mode = #tpu.pipeline_mode<synchronous>, transform_indices = @transform_2, window_bounds = array<i64: 32, 128>}, {pipeline_mode = #tpu.pipeline_mode<synchronous>, transform_indices = @transform_3, window_bounds = array<i64: 32, 128>}, {pipeline_mode = #tpu.pipeline_mode<synchronous>, transform_indices = @transform_4, window_bounds = array<i64: 1, 128>}, {pipeline_mode = #tpu.pipeline_mode<synchronous>, transform_indices = @transform_5, window_bounds = array<i64: 32, 128>}, {pipeline_mode = #tpu.pipeline_mode<synchronous>, transform_indices = @transform_6, window_bounds = array<i64: 32, 128>}, {pipeline_mode = #tpu.pipeline_mode<synchronous>, transform_indices = @transform_7, window_bounds = array<i64: 1, 128>}, {pipeline_mode = #tpu.pipeline_mode<synchronous>, transform_indices = @transform_8, window_bounds = array<i64: 32, 4>}, {pipeline_mode = #tpu.pipeline_mode<synchronous>, transform_indices = @transform_9, window_bounds = array<i64: 1, 4>}, {transform_indices = @transform_10, window_bounds = array<i64: 8, 4>}]} {
    %c0 = arith.constant 0 : index
    %0 = memref.load %arg1[%c0] : memref<1xi32, #tpu.memory_space<smem>>
    %c0_0 = arith.constant 0 : index
    %c0_1 = arith.constant 0 : index
    %c0_2 = arith.constant 0 : index
    %1 = vector.load %arg3[%c0_0, %c0_1, %c0_2] : memref<1x8x1xi32, #tpu.memory_space<vmem>>, vector<1x8x1xi32>
    %2 = vector.shape_cast %1 : vector<1x8x1xi32> to vector<8x1xi32>
    %c0_3 = arith.constant 0 : index
    %c0_4 = arith.constant 0 : index
    %c0_5 = arith.constant 0 : index
    %3 = vector.load %arg2[%c0_3, %c0_4, %c0_5] : memref<1x64x32xbf16, #tpu.memory_space<vmem>>, vector<1x64x32xbf16>
    %4 = vector.shape_cast %3 : vector<1x64x32xbf16> to vector<64x32xbf16>
    %c0_6 = arith.constant 0 : index
    %c0_7 = arith.constant 0 : index
    %5 = vector.load %arg4[%c0_6, %c0_7] : memref<32x128xbf16, #tpu.memory_space<vmem>>, vector<32x128xbf16>
    %cst = arith.constant dense<0.000000e+00> : vector<64x128xf32>
    %6 = tpu.matmul %4, %5, %cst {dimension_numbers = #tpu.dot_dimension_numbers<[1], [0], [0], [1], [0, 0, 1, 1], [], []>} : vector<64x32xbf16>, vector<32x128xbf16>, vector<64x128xf32> -> vector<64x128xf32>
    %c0_8 = arith.constant 0 : index
    %c0_9 = arith.constant 0 : index
    %7 = vector.load %arg6[%c0_8, %c0_9] : memref<1x128xf32, #tpu.memory_space<vmem>>, vector<1x128xf32>
    %8 = vector.broadcast %7 : vector<1x128xf32> to vector<64x128xf32>
    %9 = arith.addf %6, %8 : vector<64x128xf32>
    %c0_10 = arith.constant 0 : index
    %c0_11 = arith.constant 0 : index
    %10 = vector.load %arg13[%c0_10, %c0_11] : memref<64x128xf32, #tpu.memory_space<vmem>>, vector<64x128xf32>
    tpu.vector_store %arg13[%c0_10, %c0_11], %9 {strides = array<i32>} : memref<64x128xf32, #tpu.memory_space<vmem>>, vector<64x128xf32>,
    %c0_12 = arith.constant 0 : index
    %c0_13 = arith.constant 0 : index
    %11 = vector.load %arg5[%c0_12, %c0_13] : memref<32x128xbf16, #tpu.memory_space<vmem>>, vector<32x128xbf16>
    %cst_14 = arith.constant 0.000000e+00 : f32
    %12 = vector.broadcast %cst_14 : f32 to vector<8x32xf32>
    %cst_15 = arith.constant 0.000000e+00 : f32
    %13 = vector.broadcast %cst_15 : f32 to vector<8x32xf32>
    %c0_i32 = arith.constant 0 : i32
    %14 = arith.subi %0, %c0_i32 : i32
    %15 = arith.addi %c0_i32, %14 : i32
    %c1_i32 = arith.constant 1 : i32
    %16:2 = scf.for %arg15 = %c0_i32 to %15 step %c1_i32 iter_args(%arg16 = %12, %arg17 = %13) -> (vector<8x32xf32>, vector<8x32xf32>)  : i32 {
      %c4_i32 = arith.constant 4 : i32
      %37 = arith.muli %arg15, %c4_i32 : i32
      %c0_i32_38 = arith.constant 0 : i32
      %38 = arith.addi %37, %c0_i32_38 : i32
      %c8_i32 = arith.constant 8 : i32
      %39 = arith.muli %38, %c8_i32 : i32
      %40 = tpu.assume_multiple %39, 8 : i32
      %41 = arith.index_cast %40 : i32 to index
      %c0_39 = arith.constant 0 : index
      %42 = vector.load %arg13[%41, %c0_39] : memref<64x128xf32, #tpu.memory_space<vmem>>, vector<8x128xf32>
      %43 = arith.truncf %arg16 : vector<8x32xf32> to vector<8x32xbf16>
      %cst_40 = arith.constant dense<0.000000e+00> : vector<8x128xf32>
      %44 = tpu.matmul %43, %11, %cst_40 {dimension_numbers = #tpu.dot_dimension_numbers<[1], [0], [0], [1], [0, 0, 1, 1], [], []>} : vector<8x32xbf16>, vector<32x128xbf16>, vector<8x128xf32> -> vector<8x128xf32>
      %45 = arith.addf %42, %44 : vector<8x128xf32>
      %46 = vector.extract_strided_slice %45 {offsets = [0, 0], sizes = [8, 96], strides = [1, 1]} : vector<8x128xf32> to vector<8x96xf32>
      %47 = arith.negf %46 : vector<8x96xf32>
      %48 = math.exp %47 : vector<8x96xf32>
      %cst_41 = arith.constant 1.000000e+00 : f32
      %49 = vector.broadcast %cst_41 : f32 to vector<8x96xf32>
      %50 = arith.addf %49, %48 : vector<8x96xf32>
      %51 = arith.divf %49, %50 : vector<8x96xf32>
      %52 = vector.extract_strided_slice %45 {offsets = [0, 96], sizes = [8, 32], strides = [1, 1]} : vector<8x128xf32> to vector<8x32xf32>
      %53 = math.tanh %52 : vector<8x32xf32>
      %54 = vector.extract_strided_slice %51 {offsets = [0, 0], sizes = [8, 32], strides = [1, 1]} : vector<8x96xf32> to vector<8x32xf32>
      %55 = vector.extract_strided_slice %51 {offsets = [0, 32], sizes = [8, 32], strides = [1, 1]} : vector<8x96xf32> to vector<8x32xf32>
      %56 = vector.extract_strided_slice %51 {offsets = [0, 64], sizes = [8, 32], strides = [1, 1]} : vector<8x96xf32> to vector<8x32xf32>
      %57 = arith.mulf %55, %arg17 : vector<8x32xf32>
      %58 = arith.mulf %54, %53 : vector<8x32xf32>
      %59 = arith.addf %57, %58 : vector<8x32xf32>
      %60 = math.tanh %59 : vector<8x32xf32>
      %61 = arith.mulf %56, %60 : vector<8x32xf32>
      %62 = vector.broadcast %38 : i32 to vector<8x1xi32>
      %63 = arith.cmpi sgt, %2, %62 : vector<8x1xi32>
      %64 = vector.shape_cast %63 : vector<8x1xi1> to vector<8x1xi1>
      %65 = vector.broadcast %64 : vector<8x1xi1> to vector<8x32xi1>
      %66 = arith.select %65, %61, %arg16 : vector<8x32xi1>, vector<8x32xf32>
      %67 = vector.shape_cast %63 : vector<8x1xi1> to vector<8x1xi1>
      %68 = vector.broadcast %67 : vector<8x1xi1> to vector<8x32xi1>
      %69 = arith.select %68, %59, %arg17 : vector<8x32xi1>, vector<8x32xf32>
      %70 = arith.truncf %66 : vector<8x32xf32> to vector<8x32xbf16>
      %71 = arith.index_cast %40 : i32 to index
      %c0_42 = arith.constant 0 : index
      %72 = vector.load %arg14[%71, %c0_42] : memref<64x32xbf16, #tpu.memory_space<vmem>>, vector<8x32xbf16>
      tpu.vector_store %arg14[%71, %c0_42], %70 {strides = array<i32>} : memref<64x32xbf16, #tpu.memory_space<vmem>>, vector<8x32xbf16>,
      %c4_i32_43 = arith.constant 4 : i32
      %73 = arith.muli %arg15, %c4_i32_43 : i32
      %c1_i32_44 = arith.constant 1 : i32
      %74 = arith.addi %73, %c1_i32_44 : i32
      %c8_i32_45 = arith.constant 8 : i32
      %75 = arith.muli %74, %c8_i32_45 : i32
      %76 = tpu.assume_multiple %75, 8 : i32
      %77 = arith.index_cast %76 : i32 to index
      %c0_46 = arith.constant 0 : index
      %78 = vector.load %arg13[%77, %c0_46] : memref<64x128xf32, #tpu.memory_space<vmem>>, vector<8x128xf32>
      %79 = arith.truncf %66 : vector<8x32xf32> to vector<8x32xbf16>
      %cst_47 = arith.constant dense<0.000000e+00> : vector<8x128xf32>
      %80 = tpu.matmul %79, %11, %cst_47 {dimension_numbers = #tpu.dot_dimension_numbers<[1], [0], [0], [1], [0, 0, 1, 1], [], []>} : vector<8x32xbf16>, vector<32x128xbf16>, vector<8x128xf32> -> vector<8x128xf32>
      %81 = arith.addf %78, %80 : vector<8x128xf32>
      %82 = vector.extract_strided_slice %81 {offsets = [0, 0], sizes = [8, 96], strides = [1, 1]} : vector<8x128xf32> to vector<8x96xf32>
      %83 = arith.negf %82 : vector<8x96xf32>
      %84 = math.exp %83 : vector<8x96xf32>
      %cst_48 = arith.constant 1.000000e+00 : f32
      %85 = vector.broadcast %cst_48 : f32 to vector<8x96xf32>
      %86 = arith.addf %85, %84 : vector<8x96xf32>
      %87 = arith.divf %85, %86 : vector<8x96xf32>
      %88 = vector.extract_strided_slice %81 {offsets = [0, 96], sizes = [8, 32], strides = [1, 1]} : vector<8x128xf32> to vector<8x32xf32>
      %89 = math.tanh %88 : vector<8x32xf32>
      %90 = vector.extract_strided_slice %87 {offsets = [0, 0], sizes = [8, 32], strides = [1, 1]} : vector<8x96xf32> to vector<8x32xf32>
      %91 = vector.extract_strided_slice %87 {offsets = [0, 32], sizes = [8, 32], strides = [1, 1]} : vector<8x96xf32> to vector<8x32xf32>
      %92 = vector.extract_strided_slice %87 {offsets = [0, 64], sizes = [8, 32], strides = [1, 1]} : vector<8x96xf32> to vector<8x32xf32>
      %93 = arith.mulf %91, %69 : vector<8x32xf32>
      %94 = arith.mulf %90, %89 : vector<8x32xf32>
      %95 = arith.addf %93, %94 : vector<8x32xf32>
      %96 = math.tanh %95 : vector<8x32xf32>
      %97 = arith.mulf %92, %96 : vector<8x32xf32>
      %98 = vector.broadcast %74 : i32 to vector<8x1xi32>
      %99 = arith.cmpi sgt, %2, %98 : vector<8x1xi32>
      %100 = vector.shape_cast %99 : vector<8x1xi1> to vector<8x1xi1>
      %101 = vector.broadcast %100 : vector<8x1xi1> to vector<8x32xi1>
      %102 = arith.select %101, %97, %66 : vector<8x32xi1>, vector<8x32xf32>
      %103 = vector.shape_cast %99 : vector<8x1xi1> to vector<8x1xi1>
      %104 = vector.broadcast %103 : vector<8x1xi1> to vector<8x32xi1>
      %105 = arith.select %104, %95, %69 : vector<8x32xi1>, vector<8x32xf32>
      %106 = arith.truncf %102 : vector<8x32xf32> to vector<8x32xbf16>
      %107 = arith.index_cast %76 : i32 to index
      %c0_49 = arith.constant 0 : index
      %108 = vector.load %arg14[%107, %c0_49] : memref<64x32xbf16, #tpu.memory_space<vmem>>, vector<8x32xbf16>
      tpu.vector_store %arg14[%107, %c0_49], %106 {strides = array<i32>} : memref<64x32xbf16, #tpu.memory_space<vmem>>, vector<8x32xbf16>,
      %c4_i32_50 = arith.constant 4 : i32
      %109 = arith.muli %arg15, %c4_i32_50 : i32
      %c2_i32 = arith.constant 2 : i32
      %110 = arith.addi %109, %c2_i32 : i32
      %c8_i32_51 = arith.constant 8 : i32
      %111 = arith.muli %110, %c8_i32_51 : i32
      %112 = tpu.assume_multiple %111, 8 : i32
      %113 = arith.index_cast %112 : i32 to index
      %c0_52 = arith.constant 0 : index
      %114 = vector.load %arg13[%113, %c0_52] : memref<64x128xf32, #tpu.memory_space<vmem>>, vector<8x128xf32>
      %115 = arith.truncf %102 : vector<8x32xf32> to vector<8x32xbf16>
      %cst_53 = arith.constant dense<0.000000e+00> : vector<8x128xf32>
      %116 = tpu.matmul %115, %11, %cst_53 {dimension_numbers = #tpu.dot_dimension_numbers<[1], [0], [0], [1], [0, 0, 1, 1], [], []>} : vector<8x32xbf16>, vector<32x128xbf16>, vector<8x128xf32> -> vector<8x128xf32>
      %117 = arith.addf %114, %116 : vector<8x128xf32>
      %118 = vector.extract_strided_slice %117 {offsets = [0, 0], sizes = [8, 96], strides = [1, 1]} : vector<8x128xf32> to vector<8x96xf32>
      %119 = arith.negf %118 : vector<8x96xf32>
      %120 = math.exp %119 : vector<8x96xf32>
      %cst_54 = arith.constant 1.000000e+00 : f32
      %121 = vector.broadcast %cst_54 : f32 to vector<8x96xf32>
      %122 = arith.addf %121, %120 : vector<8x96xf32>
      %123 = arith.divf %121, %122 : vector<8x96xf32>
      %124 = vector.extract_strided_slice %117 {offsets = [0, 96], sizes = [8, 32], strides = [1, 1]} : vector<8x128xf32> to vector<8x32xf32>
      %125 = math.tanh %124 : vector<8x32xf32>
      %126 = vector.extract_strided_slice %123 {offsets = [0, 0], sizes = [8, 32], strides = [1, 1]} : vector<8x96xf32> to vector<8x32xf32>
      %127 = vector.extract_strided_slice %123 {offsets = [0, 32], sizes = [8, 32], strides = [1, 1]} : vector<8x96xf32> to vector<8x32xf32>
      %128 = vector.extract_strided_slice %123 {offsets = [0, 64], sizes = [8, 32], strides = [1, 1]} : vector<8x96xf32> to vector<8x32xf32>
      %129 = arith.mulf %127, %105 : vector<8x32xf32>
      %130 = arith.mulf %126, %125 : vector<8x32xf32>
      %131 = arith.addf %129, %130 : vector<8x32xf32>
      %132 = math.tanh %131 : vector<8x32xf32>
      %133 = arith.mulf %128, %132 : vector<8x32xf32>
      %134 = vector.broadcast %110 : i32 to vector<8x1xi32>
      %135 = arith.cmpi sgt, %2, %134 : vector<8x1xi32>
      %136 = vector.shape_cast %135 : vector<8x1xi1> to vector<8x1xi1>
      %137 = vector.broadcast %136 : vector<8x1xi1> to vector<8x32xi1>
      %138 = arith.select %137, %133, %102 : vector<8x32xi1>, vector<8x32xf32>
      %139 = vector.shape_cast %135 : vector<8x1xi1> to vector<8x1xi1>
      %140 = vector.broadcast %139 : vector<8x1xi1> to vector<8x32xi1>
      %141 = arith.select %140, %131, %105 : vector<8x32xi1>, vector<8x32xf32>
      %142 = arith.truncf %138 : vector<8x32xf32> to vector<8x32xbf16>
      %143 = arith.index_cast %112 : i32 to index
      %c0_55 = arith.constant 0 : index
      %144 = vector.load %arg14[%143, %c0_55] : memref<64x32xbf16, #tpu.memory_space<vmem>>, vector<8x32xbf16>
      tpu.vector_store %arg14[%143, %c0_55], %142 {strides = array<i32>} : memref<64x32xbf16, #tpu.memory_space<vmem>>, vector<8x32xbf16>,
      %c4_i32_56 = arith.constant 4 : i32
      %145 = arith.muli %arg15, %c4_i32_56 : i32
      %c3_i32 = arith.constant 3 : i32
      %146 = arith.addi %145, %c3_i32 : i32
      %c8_i32_57 = arith.constant 8 : i32
      %147 = arith.muli %146, %c8_i32_57 : i32
      %148 = tpu.assume_multiple %147, 8 : i32
      %149 = arith.index_cast %148 : i32 to index
      %c0_58 = arith.constant 0 : index
      %150 = vector.load %arg13[%149, %c0_58] : memref<64x128xf32, #tpu.memory_space<vmem>>, vector<8x128xf32>
      %151 = arith.truncf %138 : vector<8x32xf32> to vector<8x32xbf16>
      %cst_59 = arith.constant dense<0.000000e+00> : vector<8x128xf32>
      %152 = tpu.matmul %151, %11, %cst_59 {dimension_numbers = #tpu.dot_dimension_numbers<[1], [0], [0], [1], [0, 0, 1, 1], [], []>} : vector<8x32xbf16>, vector<32x128xbf16>, vector<8x128xf32> -> vector<8x128xf32>
      %153 = arith.addf %150, %152 : vector<8x128xf32>
      %154 = vector.extract_strided_slice %153 {offsets = [0, 0], sizes = [8, 96], strides = [1, 1]} : vector<8x128xf32> to vector<8x96xf32>
      %155 = arith.negf %154 : vector<8x96xf32>
      %156 = math.exp %155 : vector<8x96xf32>
      %cst_60 = arith.constant 1.000000e+00 : f32
      %157 = vector.broadcast %cst_60 : f32 to vector<8x96xf32>
      %158 = arith.addf %157, %156 : vector<8x96xf32>
      %159 = arith.divf %157, %158 : vector<8x96xf32>
      %160 = vector.extract_strided_slice %153 {offsets = [0, 96], sizes = [8, 32], strides = [1, 1]} : vector<8x128xf32> to vector<8x32xf32>
      %161 = math.tanh %160 : vector<8x32xf32>
      %162 = vector.extract_strided_slice %159 {offsets = [0, 0], sizes = [8, 32], strides = [1, 1]} : vector<8x96xf32> to vector<8x32xf32>
      %163 = vector.extract_strided_slice %159 {offsets = [0, 32], sizes = [8, 32], strides = [1, 1]} : vector<8x96xf32> to vector<8x32xf32>
      %164 = vector.extract_strided_slice %159 {offsets = [0, 64], sizes = [8, 32], strides = [1, 1]} : vector<8x96xf32> to vector<8x32xf32>
      %165 = arith.mulf %163, %141 : vector<8x32xf32>
      %166 = arith.mulf %162, %161 : vector<8x32xf32>
      %167 = arith.addf %165, %166 : vector<8x32xf32>
      %168 = math.tanh %167 : vector<8x32xf32>
      %169 = arith.mulf %164, %168 : vector<8x32xf32>
      %170 = vector.broadcast %146 : i32 to vector<8x1xi32>
      %171 = arith.cmpi sgt, %2, %170 : vector<8x1xi32>
      %172 = vector.shape_cast %171 : vector<8x1xi1> to vector<8x1xi1>
      %173 = vector.broadcast %172 : vector<8x1xi1> to vector<8x32xi1>
      %174 = arith.select %173, %169, %138 : vector<8x32xi1>, vector<8x32xf32>
      %175 = vector.shape_cast %171 : vector<8x1xi1> to vector<8x1xi1>
      %176 = vector.broadcast %175 : vector<8x1xi1> to vector<8x32xi1>
      %177 = arith.select %176, %167, %141 : vector<8x32xi1>, vector<8x32xf32>
      %178 = arith.truncf %174 : vector<8x32xf32> to vector<8x32xbf16>
      %179 = arith.index_cast %148 : i32 to index
      %c0_61 = arith.constant 0 : index
      %180 = vector.load %arg14[%179, %c0_61] : memref<64x32xbf16, #tpu.memory_space<vmem>>, vector<8x32xbf16>
      tpu.vector_store %arg14[%179, %c0_61], %178 {strides = array<i32>} : memref<64x32xbf16, #tpu.memory_space<vmem>>, vector<8x32xbf16>,
      scf.yield %174, %177 : vector<8x32xf32>, vector<8x32xf32>
    }
    %c0_16 = arith.constant 0 : index
    %c0_17 = arith.constant 0 : index
    %17 = vector.load %arg14[%c0_16, %c0_17] : memref<64x32xbf16, #tpu.memory_space<vmem>>, vector<64x32xbf16>
    %c0_18 = arith.constant 0 : index
    %c0_19 = arith.constant 0 : index
    %18 = vector.load %arg7[%c0_18, %c0_19] : memref<32x128xbf16, #tpu.memory_space<vmem>>, vector<32x128xbf16>
    %cst_20 = arith.constant dense<0.000000e+00> : vector<64x128xf32>
    %19 = tpu.matmul %17, %18, %cst_20 {dimension_numbers = #tpu.dot_dimension_numbers<[1], [0], [0], [1], [0, 0, 1, 1], [], []>} : vector<64x32xbf16>, vector<32x128xbf16>, vector<64x128xf32> -> vector<64x128xf32>
    %c0_21 = arith.constant 0 : index
    %c0_22 = arith.constant 0 : index
    %20 = vector.load %arg9[%c0_21, %c0_22] : memref<1x128xf32, #tpu.memory_space<vmem>>, vector<1x128xf32>
    %21 = vector.broadcast %20 : vector<1x128xf32> to vector<64x128xf32>
    %22 = arith.addf %19, %21 : vector<64x128xf32>
    %c0_23 = arith.constant 0 : index
    %c0_24 = arith.constant 0 : index
    %23 = vector.load %arg13[%c0_23, %c0_24] : memref<64x128xf32, #tpu.memory_space<vmem>>, vector<64x128xf32>
    tpu.vector_store %arg13[%c0_23, %c0_24], %22 {strides = array<i32>} : memref<64x128xf32, #tpu.memory_space<vmem>>, vector<64x128xf32>,
    %c0_25 = arith.constant 0 : index
    %c0_26 = arith.constant 0 : index
    %24 = vector.load %arg8[%c0_25, %c0_26] : memref<32x128xbf16, #tpu.memory_space<vmem>>, vector<32x128xbf16>
    %cst_27 = arith.constant 0.000000e+00 : f32
    %25 = vector.broadcast %cst_27 : f32 to vector<8x32xf32>
    %cst_28 = arith.constant 0.000000e+00 : f32
    %26 = vector.broadcast %cst_28 : f32 to vector<8x32xf32>
    %c0_i32_29 = arith.constant 0 : i32
    %27 = arith.subi %0, %c0_i32_29 : i32
    %28 = arith.addi %c0_i32_29, %27 : i32
    %c1_i32_30 = arith.constant 1 : i32
    %29:2 = scf.for %arg15 = %c0_i32_29 to %28 step %c1_i32_30 iter_args(%arg16 = %25, %arg17 = %26) -> (vector<8x32xf32>, vector<8x32xf32>)  : i32 {
      %c4_i32 = arith.constant 4 : i32
      %37 = arith.muli %arg15, %c4_i32 : i32
      %c0_i32_38 = arith.constant 0 : i32
      %38 = arith.addi %37, %c0_i32_38 : i32
      %c8_i32 = arith.constant 8 : i32
      %39 = arith.muli %38, %c8_i32 : i32
      %40 = tpu.assume_multiple %39, 8 : i32
      %41 = arith.index_cast %40 : i32 to index
      %c0_39 = arith.constant 0 : index
      %42 = vector.load %arg13[%41, %c0_39] : memref<64x128xf32, #tpu.memory_space<vmem>>, vector<8x128xf32>
      %43 = arith.truncf %arg16 : vector<8x32xf32> to vector<8x32xbf16>
      %cst_40 = arith.constant dense<0.000000e+00> : vector<8x128xf32>
      %44 = tpu.matmul %43, %24, %cst_40 {dimension_numbers = #tpu.dot_dimension_numbers<[1], [0], [0], [1], [0, 0, 1, 1], [], []>} : vector<8x32xbf16>, vector<32x128xbf16>, vector<8x128xf32> -> vector<8x128xf32>
      %45 = arith.addf %42, %44 : vector<8x128xf32>
      %46 = vector.extract_strided_slice %45 {offsets = [0, 0], sizes = [8, 96], strides = [1, 1]} : vector<8x128xf32> to vector<8x96xf32>
      %47 = arith.negf %46 : vector<8x96xf32>
      %48 = math.exp %47 : vector<8x96xf32>
      %cst_41 = arith.constant 1.000000e+00 : f32
      %49 = vector.broadcast %cst_41 : f32 to vector<8x96xf32>
      %50 = arith.addf %49, %48 : vector<8x96xf32>
      %51 = arith.divf %49, %50 : vector<8x96xf32>
      %52 = vector.extract_strided_slice %45 {offsets = [0, 96], sizes = [8, 32], strides = [1, 1]} : vector<8x128xf32> to vector<8x32xf32>
      %53 = math.tanh %52 : vector<8x32xf32>
      %54 = vector.extract_strided_slice %51 {offsets = [0, 0], sizes = [8, 32], strides = [1, 1]} : vector<8x96xf32> to vector<8x32xf32>
      %55 = vector.extract_strided_slice %51 {offsets = [0, 32], sizes = [8, 32], strides = [1, 1]} : vector<8x96xf32> to vector<8x32xf32>
      %56 = vector.extract_strided_slice %51 {offsets = [0, 64], sizes = [8, 32], strides = [1, 1]} : vector<8x96xf32> to vector<8x32xf32>
      %57 = arith.mulf %55, %arg17 : vector<8x32xf32>
      %58 = arith.mulf %54, %53 : vector<8x32xf32>
      %59 = arith.addf %57, %58 : vector<8x32xf32>
      %60 = math.tanh %59 : vector<8x32xf32>
      %61 = arith.mulf %56, %60 : vector<8x32xf32>
      %62 = vector.broadcast %38 : i32 to vector<8x1xi32>
      %63 = arith.cmpi sgt, %2, %62 : vector<8x1xi32>
      %64 = vector.shape_cast %63 : vector<8x1xi1> to vector<8x1xi1>
      %65 = vector.broadcast %64 : vector<8x1xi1> to vector<8x32xi1>
      %66 = arith.select %65, %61, %arg16 : vector<8x32xi1>, vector<8x32xf32>
      %67 = vector.shape_cast %63 : vector<8x1xi1> to vector<8x1xi1>
      %68 = vector.broadcast %67 : vector<8x1xi1> to vector<8x32xi1>
      %69 = arith.select %68, %59, %arg17 : vector<8x32xi1>, vector<8x32xf32>
      %c4_i32_42 = arith.constant 4 : i32
      %70 = arith.muli %arg15, %c4_i32_42 : i32
      %c1_i32_43 = arith.constant 1 : i32
      %71 = arith.addi %70, %c1_i32_43 : i32
      %c8_i32_44 = arith.constant 8 : i32
      %72 = arith.muli %71, %c8_i32_44 : i32
      %73 = tpu.assume_multiple %72, 8 : i32
      %74 = arith.index_cast %73 : i32 to index
      %c0_45 = arith.constant 0 : index
      %75 = vector.load %arg13[%74, %c0_45] : memref<64x128xf32, #tpu.memory_space<vmem>>, vector<8x128xf32>
      %76 = arith.truncf %66 : vector<8x32xf32> to vector<8x32xbf16>
      %cst_46 = arith.constant dense<0.000000e+00> : vector<8x128xf32>
      %77 = tpu.matmul %76, %24, %cst_46 {dimension_numbers = #tpu.dot_dimension_numbers<[1], [0], [0], [1], [0, 0, 1, 1], [], []>} : vector<8x32xbf16>, vector<32x128xbf16>, vector<8x128xf32> -> vector<8x128xf32>
      %78 = arith.addf %75, %77 : vector<8x128xf32>
      %79 = vector.extract_strided_slice %78 {offsets = [0, 0], sizes = [8, 96], strides = [1, 1]} : vector<8x128xf32> to vector<8x96xf32>
      %80 = arith.negf %79 : vector<8x96xf32>
      %81 = math.exp %80 : vector<8x96xf32>
      %cst_47 = arith.constant 1.000000e+00 : f32
      %82 = vector.broadcast %cst_47 : f32 to vector<8x96xf32>
      %83 = arith.addf %82, %81 : vector<8x96xf32>
      %84 = arith.divf %82, %83 : vector<8x96xf32>
      %85 = vector.extract_strided_slice %78 {offsets = [0, 96], sizes = [8, 32], strides = [1, 1]} : vector<8x128xf32> to vector<8x32xf32>
      %86 = math.tanh %85 : vector<8x32xf32>
      %87 = vector.extract_strided_slice %84 {offsets = [0, 0], sizes = [8, 32], strides = [1, 1]} : vector<8x96xf32> to vector<8x32xf32>
      %88 = vector.extract_strided_slice %84 {offsets = [0, 32], sizes = [8, 32], strides = [1, 1]} : vector<8x96xf32> to vector<8x32xf32>
      %89 = vector.extract_strided_slice %84 {offsets = [0, 64], sizes = [8, 32], strides = [1, 1]} : vector<8x96xf32> to vector<8x32xf32>
      %90 = arith.mulf %88, %69 : vector<8x32xf32>
      %91 = arith.mulf %87, %86 : vector<8x32xf32>
      %92 = arith.addf %90, %91 : vector<8x32xf32>
      %93 = math.tanh %92 : vector<8x32xf32>
      %94 = arith.mulf %89, %93 : vector<8x32xf32>
      %95 = vector.broadcast %71 : i32 to vector<8x1xi32>
      %96 = arith.cmpi sgt, %2, %95 : vector<8x1xi32>
      %97 = vector.shape_cast %96 : vector<8x1xi1> to vector<8x1xi1>
      %98 = vector.broadcast %97 : vector<8x1xi1> to vector<8x32xi1>
      %99 = arith.select %98, %94, %66 : vector<8x32xi1>, vector<8x32xf32>
      %100 = vector.shape_cast %96 : vector<8x1xi1> to vector<8x1xi1>
      %101 = vector.broadcast %100 : vector<8x1xi1> to vector<8x32xi1>
      %102 = arith.select %101, %92, %69 : vector<8x32xi1>, vector<8x32xf32>
      %c4_i32_48 = arith.constant 4 : i32
      %103 = arith.muli %arg15, %c4_i32_48 : i32
      %c2_i32 = arith.constant 2 : i32
      %104 = arith.addi %103, %c2_i32 : i32
      %c8_i32_49 = arith.constant 8 : i32
      %105 = arith.muli %104, %c8_i32_49 : i32
      %106 = tpu.assume_multiple %105, 8 : i32
      %107 = arith.index_cast %106 : i32 to index
      %c0_50 = arith.constant 0 : index
      %108 = vector.load %arg13[%107, %c0_50] : memref<64x128xf32, #tpu.memory_space<vmem>>, vector<8x128xf32>
      %109 = arith.truncf %99 : vector<8x32xf32> to vector<8x32xbf16>
      %cst_51 = arith.constant dense<0.000000e+00> : vector<8x128xf32>
      %110 = tpu.matmul %109, %24, %cst_51 {dimension_numbers = #tpu.dot_dimension_numbers<[1], [0], [0], [1], [0, 0, 1, 1], [], []>} : vector<8x32xbf16>, vector<32x128xbf16>, vector<8x128xf32> -> vector<8x128xf32>
      %111 = arith.addf %108, %110 : vector<8x128xf32>
      %112 = vector.extract_strided_slice %111 {offsets = [0, 0], sizes = [8, 96], strides = [1, 1]} : vector<8x128xf32> to vector<8x96xf32>
      %113 = arith.negf %112 : vector<8x96xf32>
      %114 = math.exp %113 : vector<8x96xf32>
      %cst_52 = arith.constant 1.000000e+00 : f32
      %115 = vector.broadcast %cst_52 : f32 to vector<8x96xf32>
      %116 = arith.addf %115, %114 : vector<8x96xf32>
      %117 = arith.divf %115, %116 : vector<8x96xf32>
      %118 = vector.extract_strided_slice %111 {offsets = [0, 96], sizes = [8, 32], strides = [1, 1]} : vector<8x128xf32> to vector<8x32xf32>
      %119 = math.tanh %118 : vector<8x32xf32>
      %120 = vector.extract_strided_slice %117 {offsets = [0, 0], sizes = [8, 32], strides = [1, 1]} : vector<8x96xf32> to vector<8x32xf32>
      %121 = vector.extract_strided_slice %117 {offsets = [0, 32], sizes = [8, 32], strides = [1, 1]} : vector<8x96xf32> to vector<8x32xf32>
      %122 = vector.extract_strided_slice %117 {offsets = [0, 64], sizes = [8, 32], strides = [1, 1]} : vector<8x96xf32> to vector<8x32xf32>
      %123 = arith.mulf %121, %102 : vector<8x32xf32>
      %124 = arith.mulf %120, %119 : vector<8x32xf32>
      %125 = arith.addf %123, %124 : vector<8x32xf32>
      %126 = math.tanh %125 : vector<8x32xf32>
      %127 = arith.mulf %122, %126 : vector<8x32xf32>
      %128 = vector.broadcast %104 : i32 to vector<8x1xi32>
      %129 = arith.cmpi sgt, %2, %128 : vector<8x1xi32>
      %130 = vector.shape_cast %129 : vector<8x1xi1> to vector<8x1xi1>
      %131 = vector.broadcast %130 : vector<8x1xi1> to vector<8x32xi1>
      %132 = arith.select %131, %127, %99 : vector<8x32xi1>, vector<8x32xf32>
      %133 = vector.shape_cast %129 : vector<8x1xi1> to vector<8x1xi1>
      %134 = vector.broadcast %133 : vector<8x1xi1> to vector<8x32xi1>
      %135 = arith.select %134, %125, %102 : vector<8x32xi1>, vector<8x32xf32>
      %c4_i32_53 = arith.constant 4 : i32
      %136 = arith.muli %arg15, %c4_i32_53 : i32
      %c3_i32 = arith.constant 3 : i32
      %137 = arith.addi %136, %c3_i32 : i32
      %c8_i32_54 = arith.constant 8 : i32
      %138 = arith.muli %137, %c8_i32_54 : i32
      %139 = tpu.assume_multiple %138, 8 : i32
      %140 = arith.index_cast %139 : i32 to index
      %c0_55 = arith.constant 0 : index
      %141 = vector.load %arg13[%140, %c0_55] : memref<64x128xf32, #tpu.memory_space<vmem>>, vector<8x128xf32>
      %142 = arith.truncf %132 : vector<8x32xf32> to vector<8x32xbf16>
      %cst_56 = arith.constant dense<0.000000e+00> : vector<8x128xf32>
      %143 = tpu.matmul %142, %24, %cst_56 {dimension_numbers = #tpu.dot_dimension_numbers<[1], [0], [0], [1], [0, 0, 1, 1], [], []>} : vector<8x32xbf16>, vector<32x128xbf16>, vector<8x128xf32> -> vector<8x128xf32>
      %144 = arith.addf %141, %143 : vector<8x128xf32>
      %145 = vector.extract_strided_slice %144 {offsets = [0, 0], sizes = [8, 96], strides = [1, 1]} : vector<8x128xf32> to vector<8x96xf32>
      %146 = arith.negf %145 : vector<8x96xf32>
      %147 = math.exp %146 : vector<8x96xf32>
      %cst_57 = arith.constant 1.000000e+00 : f32
      %148 = vector.broadcast %cst_57 : f32 to vector<8x96xf32>
      %149 = arith.addf %148, %147 : vector<8x96xf32>
      %150 = arith.divf %148, %149 : vector<8x96xf32>
      %151 = vector.extract_strided_slice %144 {offsets = [0, 96], sizes = [8, 32], strides = [1, 1]} : vector<8x128xf32> to vector<8x32xf32>
      %152 = math.tanh %151 : vector<8x32xf32>
      %153 = vector.extract_strided_slice %150 {offsets = [0, 0], sizes = [8, 32], strides = [1, 1]} : vector<8x96xf32> to vector<8x32xf32>
      %154 = vector.extract_strided_slice %150 {offsets = [0, 32], sizes = [8, 32], strides = [1, 1]} : vector<8x96xf32> to vector<8x32xf32>
      %155 = vector.extract_strided_slice %150 {offsets = [0, 64], sizes = [8, 32], strides = [1, 1]} : vector<8x96xf32> to vector<8x32xf32>
      %156 = arith.mulf %154, %135 : vector<8x32xf32>
      %157 = arith.mulf %153, %152 : vector<8x32xf32>
      %158 = arith.addf %156, %157 : vector<8x32xf32>
      %159 = math.tanh %158 : vector<8x32xf32>
      %160 = arith.mulf %155, %159 : vector<8x32xf32>
      %161 = vector.broadcast %137 : i32 to vector<8x1xi32>
      %162 = arith.cmpi sgt, %2, %161 : vector<8x1xi32>
      %163 = vector.shape_cast %162 : vector<8x1xi1> to vector<8x1xi1>
      %164 = vector.broadcast %163 : vector<8x1xi1> to vector<8x32xi1>
      %165 = arith.select %164, %160, %132 : vector<8x32xi1>, vector<8x32xf32>
      %166 = vector.shape_cast %162 : vector<8x1xi1> to vector<8x1xi1>
      %167 = vector.broadcast %166 : vector<8x1xi1> to vector<8x32xi1>
      %168 = arith.select %167, %158, %135 : vector<8x32xi1>, vector<8x32xf32>
      scf.yield %165, %168 : vector<8x32xf32>, vector<8x32xf32>
    }
    %30 = arith.truncf %29#0 : vector<8x32xf32> to vector<8x32xbf16>
    %c0_31 = arith.constant 0 : index
    %c0_32 = arith.constant 0 : index
    %31 = vector.load %arg10[%c0_31, %c0_32] : memref<32x4xbf16, #tpu.memory_space<vmem>>, vector<32x4xbf16>
    %cst_33 = arith.constant dense<0.000000e+00> : vector<8x4xf32>
    %32 = tpu.matmul %30, %31, %cst_33 {dimension_numbers = #tpu.dot_dimension_numbers<[1], [0], [0], [1], [0, 0, 1, 1], [], []>} : vector<8x32xbf16>, vector<32x4xbf16>, vector<8x4xf32> -> vector<8x4xf32>
    %c0_34 = arith.constant 0 : index
    %c0_35 = arith.constant 0 : index
    %33 = vector.load %arg11[%c0_34, %c0_35] : memref<1x4xf32, #tpu.memory_space<vmem>>, vector<1x4xf32>
    %34 = vector.broadcast %33 : vector<1x4xf32> to vector<8x4xf32>
    %35 = arith.addf %32, %34 : vector<8x4xf32>
    %c0_36 = arith.constant 0 : index
    %c0_37 = arith.constant 0 : index
    %36 = vector.load %arg12[%c0_36, %c0_37] : memref<8x4xf32, #tpu.memory_space<vmem>>, vector<8x4xf32>
    tpu.vector_store %arg12[%c0_36, %c0_37], %35 {strides = array<i32>} : memref<8x4xf32, #tpu.memory_space<vmem>>, vector<8x4xf32>,
    return
  }
  func.func @transform_0(%arg0: i32, %arg1: memref<1xi32, #tpu.memory_space<smem>>) -> (i32, i32, i32) {
    %c0_i32 = arith.constant 0 : i32
    %c0_i32_0 = arith.constant 0 : i32
    %c0_i32_1 = arith.constant 0 : i32
    return %arg0, %c0_i32, %c0_i32_0 : i32, i32, i32
  }
  func.func @transform_1(%arg0: i32, %arg1: memref<1xi32, #tpu.memory_space<smem>>) -> (i32, i32, i32) {
    %c0_i32 = arith.constant 0 : i32
    %c0_i32_0 = arith.constant 0 : i32
    %c0_i32_1 = arith.constant 0 : i32
    return %arg0, %c0_i32, %c0_i32_0 : i32, i32, i32
  }
  func.func @transform_2(%arg0: i32, %arg1: memref<1xi32, #tpu.memory_space<smem>>) -> (i32, i32) {
    %c0_i32 = arith.constant 0 : i32
    %c0_i32_0 = arith.constant 0 : i32
    %c0_i32_1 = arith.constant 0 : i32
    return %c0_i32, %c0_i32_0 : i32, i32
  }
  func.func @transform_3(%arg0: i32, %arg1: memref<1xi32, #tpu.memory_space<smem>>) -> (i32, i32) {
    %c0_i32 = arith.constant 0 : i32
    %c0_i32_0 = arith.constant 0 : i32
    %c0_i32_1 = arith.constant 0 : i32
    return %c0_i32, %c0_i32_0 : i32, i32
  }
  func.func @transform_4(%arg0: i32, %arg1: memref<1xi32, #tpu.memory_space<smem>>) -> (i32, i32) {
    %c0_i32 = arith.constant 0 : i32
    %c0_i32_0 = arith.constant 0 : i32
    %c0_i32_1 = arith.constant 0 : i32
    return %c0_i32, %c0_i32_0 : i32, i32
  }
  func.func @transform_5(%arg0: i32, %arg1: memref<1xi32, #tpu.memory_space<smem>>) -> (i32, i32) {
    %c0_i32 = arith.constant 0 : i32
    %c0_i32_0 = arith.constant 0 : i32
    %c0_i32_1 = arith.constant 0 : i32
    return %c0_i32, %c0_i32_0 : i32, i32
  }
  func.func @transform_6(%arg0: i32, %arg1: memref<1xi32, #tpu.memory_space<smem>>) -> (i32, i32) {
    %c0_i32 = arith.constant 0 : i32
    %c0_i32_0 = arith.constant 0 : i32
    %c0_i32_1 = arith.constant 0 : i32
    return %c0_i32, %c0_i32_0 : i32, i32
  }
  func.func @transform_7(%arg0: i32, %arg1: memref<1xi32, #tpu.memory_space<smem>>) -> (i32, i32) {
    %c0_i32 = arith.constant 0 : i32
    %c0_i32_0 = arith.constant 0 : i32
    %c0_i32_1 = arith.constant 0 : i32
    return %c0_i32, %c0_i32_0 : i32, i32
  }
  func.func @transform_8(%arg0: i32, %arg1: memref<1xi32, #tpu.memory_space<smem>>) -> (i32, i32) {
    %c0_i32 = arith.constant 0 : i32
    %c0_i32_0 = arith.constant 0 : i32
    %c0_i32_1 = arith.constant 0 : i32
    return %c0_i32, %c0_i32_0 : i32, i32
  }
  func.func @transform_9(%arg0: i32, %arg1: memref<1xi32, #tpu.memory_space<smem>>) -> (i32, i32) {
    %c0_i32 = arith.constant 0 : i32
    %c0_i32_0 = arith.constant 0 : i32
    %c0_i32_1 = arith.constant 0 : i32
    return %c0_i32, %c0_i32_0 : i32, i32
  }
  func.func @transform_10(%arg0: i32, %arg1: memref<1xi32, #tpu.memory_space<smem>>) -> (i32, i32) {
    %c0_i32 = arith.constant 0 : i32
    %c0_i32_0 = arith.constant 0 : i32
    return %arg0, %c0_i32 : i32, i32
  }
}

</mosaic_0001>

<bundles_post_ra>
// kernel: tpu_custom_call.1
= control target key start
LH: loop header
LB: loop body
LE: loop exit
PB: predicated region body
PF: predicated region fallthrough
CT: control target
= control target key end

     0   :  { %17 = vsyncpa [#allocation7], 0  ;;  %s1404_s20 = smov [#allocation6]   ;;  %s1405_s22 = smov 64   ;;  %s1777_s0 = inlined_call_operand.<no memory space> [shape: s32[1], index: 0, kind: input, shape index: {}]   ;;  %s1778_s1 = inlined_call_operand.vmem [shape: bf16[1,64,32], index: 1, kind: input, shape index: {}]   ;;  %s1779_s2 = inlined_call_operand.vmem [shape: s32[1,8,1], index: 2, kind: input, shape index: {}]   ;;  %s1780_s3 = inlined_call_operand.vmem [shape: bf16[32,128], index: 3, kind: input, shape index: {}]   ;;  %s1781_s4 = inlined_call_operand.vmem [shape: bf16[32,128], index: 4, kind: input, shape index: {}]   ;;  %s1782_s5 = inlined_call_operand.vmem [shape: f32[1,128], index: 5, kind: input, shape index: {}]   ;;  %s1783_s6 = inlined_call_operand.vmem [shape: bf16[32,128], index: 6, kind: input, shape index: {}]   ;;  %s1784_s7 = inlined_call_operand.hbm [shape: bf16[32,128], index: 7, kind: input, shape index: {}]   ;;  %s1785_s8 = inlined_call_operand.vmem [shape: f32[1,128], index: 8, kind: input, shape index: {}]   ;;  %s1786_s9 = inlined_call_operand.vmem [shape: bf16[32,4], index: 9, kind: input, shape index: {}]   ;;  %s1787_s10 = inlined_call_operand.vmem [shape: f32[1,4], index: 10, kind: input, shape index: {}]   ;;  %s1788_s11 = inlined_call_operand.vmem [shape: f32[8,4], index: 11, kind: output, shape index: {}]  }
   0x1   :  { %s34_s19 = sshll.u32 %s1784_s7, 4  ;;  %s36_s21 = sshll.u32 %s1404_s20, 4  ;;  %s35_s19 = int_to_ptr.hbm [resolvable:$true] %s34_s19  ;;  %s37_s21 = int_to_ptr.vmem [resolvable:$true] %s36_s21 }
   0x2   :  { %s1406_s23 = smov 4  }
   0x3   :  { %42 = dma.hbm_to_vmem [thread:$0]  %s35_s19, 256, %s37_s21, [#allocation7], %s1405_s22, %s1405_s22, %s1406_s23  }
   0x4   :  { %1374 = dma.done.wait [#allocation7], 256  }
   0x5   :  { %1375 = vsyncadd [#allocation7], 4294967040  ;;  %v1481_v0 = vld [vmem:[%s1779_s2] sm:$0xff]  ;;  %v1496_v3 = vld [vmem:[%s1781_s4 + $0x8] sm:$0xf]  ;;  %vm104_vm0 = vcmask 261120  }
   0x6   :  { %v1486_v1 = vld [vmem:[%s1781_s4] sm:$0xf]  ;;  %v1491_v2 = vld [vmem:[%s1781_s4] sm:$0xf0]  ;;  %v1501_v4 = vld [vmem:[%s1781_s4 + $0x8] sm:$0xf0] }
   0x7   :  { %v1146_v5 = vld [vmem:[%s1780_s3 + $0x8] sm:$0xff]  ;;  %v1145_v6 = vld [vmem:[%s1780_s3] sm:$0xff]  ;;  %v1143_v9 = vld [vmem:[%s1778_s1 + $0x10] sm:$0xff]  ;;  %p1041_p0 = scmp.le.s32.totalorder %s1777_s0, 0 }
   0x8   :  { %123 = vmatpush.bf16.msra.mxu0 %v1146_v5  ;;  %1174 = vmatpush.bf16.msra.mxu1 %v1146_v5  ;;  %v1141_v7 = vld [vmem:[%s1778_s1] sm:$0xff]  ;;  %v1142_v8 = vld [vmem:[%s1778_s1 + $0x8] sm:$0xff]  ;;  %v1144_v10 = vld [vmem:[%s1778_s1 + $0x18] sm:$0xff]  ;;  %s1539_s7 = smov (!%p1041_p0), 0  }
   0x9   :  { %1175 = vmatpush.bf16.msra.mxu2 %v1146_v5  ;;  %1176 = vmatpush.bf16.msra.mxu3 %v1146_v5  ;;  %v1251_v11 = vld [vmem:[%s1782_s5] ss:$0 sm:$0xff] }
   0xc   :  { %124 = vmatpush.bf16.msra.mxu0 %v1145_v6  ;;  %1177 = vmatpush.bf16.msra.mxu1 %v1145_v6 }
   0xd   :  { %1178 = vmatpush.bf16.msra.mxu2 %v1145_v6  ;;  %1179 = vmatpush.bf16.msra.mxu3 %v1145_v6 }
   0xf   :  { %1037 = vmatmul.msk.bf16.vlgmr.msra.gmra.mxu0 %vm104_vm0, %v1141_v7  ;;  %1038 = vmatmul.msk.bf16.vlgmr.msra.gmra.mxu1 %vm104_vm0, %v1142_v8 }
  0x10   :  { %1039 = vmatmul.msk.bf16.vlgmr.msra.gmra.mxu2 %vm104_vm0, %v1143_v9  ;;  %1040 = vmatmul.msk.bf16.vlgmr.msra.gmra.mxu3 %vm104_vm0, %v1144_v10 }
  0x8c   :  { %v126_v12 = vpop.f32.mrf.mxu0  ;;  %v131_v13 = vpop.f32.mrf.mxu1 }
  0x8d   :  { %v127_v14 = vadd.f32 %v1251_v11, %v126_v12  ;;  %v132_v15 = vadd.f32 %v1251_v11, %v131_v13 }
  0x8f   :  { %146 = vst [vmem:[#allocation2] sm:$0xff] %v127_v14 }
  0x90   :  { %148 = vst [vmem:[#allocation2 + $0x10] sm:$0xff] %v132_v15 }
  0x93   :  { %v136_v16 = vpop.f32.mrf.mxu2  ;;  %v141_v17 = vpop.f32.mrf.mxu3 }
  0x94   :  { %v137_v18 = vadd.f32 %v1251_v11, %v136_v16  ;;  %v142_v19 = vadd.f32 %v1251_v11, %v141_v17  ;;  %v128_v20 = vpop.f32.mrf.mxu0  ;;  %v133_v21 = vpop.f32.mrf.mxu1 }
  0x95   :  { %v129_v22 = vadd.f32 %v1251_v11, %v128_v20  ;;  %v134_v23 = vadd.f32 %v1251_v11, %v133_v21 }
  0x96   :  { %150 = vst [vmem:[#allocation2 + $0x20] sm:$0xff] %v137_v18 }
  0x97   :  { %152 = vst [vmem:[#allocation2 + $0x30] sm:$0xff] %v142_v19 }
  0x98   :  { %147 = vst [vmem:[#allocation2 + $0x8] sm:$0xff] %v129_v22 }
  0x99   :  { %149 = vst [vmem:[#allocation2 + $0x18] sm:$0xff] %v134_v23 }
  0x9b   :  { %v138_v24 = vpop.f32.mrf.mxu2  ;;  %v143_v25 = vpop.f32.mrf.mxu3  ;;  %995 = sbr.rel (%p1041_p0) target bundleno = 2629 (0xa45), region = 84 }
  0x9c   :  { %v139_v26 = vadd.f32 %v1251_v11, %v138_v24  ;;  %v144_v27 = vadd.f32 %v1251_v11, %v143_v25 }
  0x9e   :  { %151 = vst [vmem:[#allocation2 + $0x28] sm:$0xff] %v139_v26 }
  0x9f   :  { %153 = vst [vmem:[#allocation2 + $0x38] sm:$0xff] %v144_v27 }
  0xa0   :  { %v1535_v28 = vmov 0.0   ;;  %v1537_v29 = vmov 0.0  }
  0xa1 LB: > { %v1051_v30 = vor.u32 %v1501_v4, %v1496_v3  ;;  %v170_v31 = vpack.c.bf16 %v1382_v29, %v1382_v29  ;;  %v1047_v32 = vor.u32 %v1491_v2, %v1486_v1  ;;  %s1407_s28 = smov 64   ;;  %s1559_s29 = sshll.u32 %s1386_s7, 5  ;;  %v1409_v43 = vmov 0   ;;  %s1386_s7 = sphi %s1539_s7, %s161_s7   ;;  %v1382_v29 = vphi %v1537_v29, %v491_v29   ;;  %v1378_v28 = vphi %v1535_v28, %v1789_v28  }
  0xa2   : > { %s1562_s30 = scalar_lea.vmem [#allocation2], %s1559_s29  ;;  %s1408_s12 = smov 32   ;;  %1252 = vset.pattern.permute.xlu2 %v1409_v43  ;;  %1253 = vset.pattern.permute.xlu0 %v1409_v43 }
  0xa3   : > { %195 = vmatpush.bf16.msra.mxu0 %v1051_v30  ;;  %277 = vmatpush.bf16.msra.mxu1 %v1051_v30  ;;  %s1567_s13 = sshll.u32 %s1386_s7, 2  ;;  %s254_s16 = sshra.s32 %s1559_s29, 3 }
  0xa4   : > { %358 = vmatpush.bf16.msra.mxu2 %v1051_v30  ;;  %439 = vmatpush.bf16.msra.mxu3 %v1051_v30  ;;  %v240_v42 = vstv %s1567_s13  ;;  %s260_s2 = sadd.s32 1, %s1567_s13  ;;  %s341_s14 = sadd.s32 2, %s1567_s13 }
  0xa5   : > { %172 = vrot.lane.b32.xlu0 %v170_v31, %s1407_s28  ;;  %vm241_vm1 = vcmp.gt.s32.totalorder %v1481_v0, %v240_v42  ;;  %v322_v18 = vstv %s260_s2  ;;  %v403_v20 = vstv %s341_s14  ;;  %s422_s15 = sadd.s32 3, %s1567_s13  ;;  %s1054_s17 = sshll.u32 %s254_s16, 2 }
  0xa6   : > { %v169_v34 = vld [vmem:[%s1562_s30] sm:$0xff]  ;;  %v242_v44 = vsel %vm241_vm1, 1, %v1409_v43  ;;  %v1058_v10 = vld [vmem:[%s1562_s30 + $0x8] sm:$0xff]  ;;  %vm323_vm7 = vcmp.gt.s32.totalorder %v1481_v0, %v322_v18  ;;  %vm404_vm8 = vcmp.gt.s32.totalorder %v1481_v0, %v403_v20  ;;  %s257_s18 = scalar_lea.vmem [#allocation3], %s1054_s17  ;;  %s1150_s19 = sadd.s32 8, %s1559_s29 }
  0xa7   : > { %196 = vmatpush.bf16.msra.mxu0 %v1047_v32  ;;  %278 = vmatpush.bf16.msra.mxu1 %v1047_v32  ;;  %v324_v19 = vsel %vm323_vm7, 1, %v1409_v43  ;;  %v405_v21 = vsel %vm404_vm8, 1, %v1409_v43  ;;  %s1153_s20 = sadd.s32 16, %s1559_s29  ;;  %s336_s4 = sshra.s32 %s1150_s19, 3 }
  0xa8   : > { %359 = vmatpush.bf16.msra.mxu2 %v1047_v32  ;;  %440 = vmatpush.bf16.msra.mxu3 %v1047_v32  ;;  %s417_s21 = sshra.s32 %s1153_s20, 3  ;;  %s1061_s23 = sshll.u32 %s336_s4, 2 }
  0xa9   : > { %244 = vperm.xlu2 %1252, %v242_v44   ;;  %s1068_s24 = sshll.u32 %s417_s21, 2  ;;  %s339_s3 = scalar_lea.vmem [#allocation3], %s1061_s23 }
  0xaa   : > { %s420_s25 = scalar_lea.vmem [#allocation3], %s1068_s24  ;;  %s1156_s1 = sadd.s32 24, %s1559_s29 }
  0xab   : > { %s498_s5 = sshra.s32 %s1156_s1, 3  ;;  %s161_s7 = sadd.s32 1, %s1386_s7  }
  0xac   : > { %s1075_s26 = sshll.u32 %s498_s5, 2  ;;  %p160_p1 = scmp.ge.s32.totalorder %s161_s7, %s1777_s0 }
  0xad   : > { %s501_s27 = scalar_lea.vmem [#allocation3], %s1075_s26 }
 0x103   : > { %v245_v61 = vpop.permute.xlu2 %244 }
 0x104   : > { %vm246_vm6 = vcmp.eq.s32.totalorder %v245_v61, 1 }
 0x117   : > { %v173_v33 = vpop.permute.xlu0 %172 }
 0x118   : > { %1052 = vmatmul.msk.bf16.vlgmr.msra.gmra.mxu0 %vm104_vm0, %v173_v33 }
 0x195   : > { %v198_v35 = vpop.f32.mrf.mxu0 }
 0x196   : > { %v202_v36 = vadd.f32 %v198_v35, %v169_v34 }
 0x198   : > { %1254 = vtanh.f32 %v202_v36  ;;  %v1053_v39 = vmul.f32 -1.442695, %v202_v36 }
 0x19a   : > { %1256 = vpow2.f32 %v1053_v39 }
 0x19d   : > { %v200_v37 = vpop.f32.mrf.mxu0 }
 0x19e   : > { %v1255_v38 = vpop.eup %1254 }
 0x19f   : > { %225 = vrot.lane.b32.xlu0 %v1255_v38, %s1408_s12 }
 0x1a0   : > { %v1257_v40 = vpop.eup %1256 }
 0x1a1   : > { %v206_v41 = vadd.f32 1.0, %v1257_v40 }
 0x1a3   : > { %1258 = vrcp.f32 %v206_v41  ;;  %v218_v50 = vand.u32 2147483648, %v206_v41  ;;  %vm212_vm3 = vweird.f32 %v206_v41  ;;  %v216_v51 = vand.u32 2147483647, %v206_v41 }
 0x1a5   : > { %v219_v53 = vor.u32 1.1754944e-38, %v218_v50  ;;  %vm217_vm5 = vcmp.eq.f32.partialorder %v216_v51, 8.507059e+37 }
 0x1a9   : > { %v1259_v45 = vpop.eup %1258 }
 0x1aa   : > { %v208_v46 = vmul.f32 %v1259_v45, %v206_v41  ;;  %vm213_vm2 = vweird.f32 %v1259_v45 }
 0x1ab   : > { %vm214_vm4 = vmor %vm212_vm3, %vm213_vm2 }
 0x1ac   : > { %v209_v47 = vsub.f32 1.0, %v208_v46 }
 0x1ae   : > { %v210_v48 = vmul.f32 %v1259_v45, %v209_v47 }
 0x1b0   : > { %v211_v49 = vadd.f32 %v1259_v45, %v210_v48  ;;  %v1065_v48 = vld [vmem:[%s1562_s30 + $0x10] sm:$0xff] }
 0x1b2   : > { %v215_v52 = vsel %vm214_vm4, %v1259_v45, %v211_v49 }
 0x1b3   : > { %v220_v55 = vsel %vm217_vm5, %v219_v53, %v215_v52 }
 0x1b4   : > { %v223_v57 = vmul.f32 %v1378_v28, %v220_v55 }
 0x211   : > { %v226_v54 = vpop.permute.xlu0 %225 }
 0x212   : > { %v228_v56 = vmul.f32 %v226_v54, %v220_v55 }
 0x214   : > { %230 = vrot.lane.b32.xlu1 %v228_v56, %s1408_s12 }
 0x286   : > { %v231_v58 = vpop.permute.xlu1 %230 }
 0x287   : > { %v233_v59 = vadd.f32 %v231_v58, %v223_v57 }
 0x289   : > { %1260 = vtanh.f32 %v233_v59  ;;  %v248_v35 = vsel %vm246_vm6, %v233_v59, %v1378_v28 }
 0x28f   : > { %v1261_v60 = vpop.eup %1260 }
 0x290   : > { %236 = vrot.lane.b32.xlu1 %v1261_v60, %s1408_s12 }
 0x302   : > { %v237_v62 = vpop.permute.xlu1 %236 }
 0x303   : > { %v239_v63 = vmul.f32 %v237_v62, %v220_v55 }
 0x305   : > { %v247_v5 = vsel %vm246_vm6, %v239_v63, %v1382_v29 }
 0x306   : > { %v1579_v6 = vpack.c.bf16 %v247_v5, %v247_v5 }
 0x308   : > { %v264_v7 = vunpack.c.l.b16 %v1579_v6 }
 0x30a   : > { %v265_v8 = vpack.c.b16 %v264_v7, %v264_v7 }
 0x30c   : > { %266 = vrot.lane.b32.xlu2 %v265_v8, %s1407_s28 }
 0x366   : > { %v267_v9 = vpop.permute.xlu2 %266 }
 0x367   : > { %1059 = vmatmul.msk.bf16.vlgmr.msra.gmra.mxu1 %vm104_vm0, %v267_v9 }
 0x3e4   : > { %v280_v11 = vpop.f32.mrf.mxu1 }
 0x3e5   : > { %v284_v12 = vadd.f32 %v1058_v10, %v280_v11 }
 0x3e7   : > { %1262 = vtanh.f32 %v284_v12  ;;  %v1060_v15 = vmul.f32 -1.442695, %v284_v12 }
 0x3e9   : > { %1264 = vpow2.f32 %v1060_v15 }
 0x3ec   : > { %v282_v13 = vpop.f32.mrf.mxu1 }
 0x3ed   : > { %v1263_v14 = vpop.eup %1262 }
 0x3ee   : > { %307 = vrot.lane.b32.xlu0 %v1263_v14, %s1408_s12 }
 0x3ef   : > { %v1265_v16 = vpop.eup %1264 }
 0x3f0   : > { %v288_v17 = vadd.f32 1.0, %v1265_v16 }
 0x3f2   : > { %1266 = vrcp.f32 %v288_v17  ;;  %v300_v27 = vand.u32 2147483648, %v288_v17  ;;  %vm294_vm10 = vweird.f32 %v288_v17  ;;  %v298_v29 = vand.u32 2147483647, %v288_v17 }
 0x3f4   : > { %v301_v31 = vor.u32 1.1754944e-38, %v300_v27  ;;  %vm299_vm12 = vcmp.eq.f32.partialorder %v298_v29, 8.507059e+37  ;;  %v484_v29 = vstv %s422_s15 }
 0x3f5   : > { %vm485_vm4 = vcmp.gt.s32.totalorder %v1481_v0, %v484_v29 }
 0x3f6   : > { %326 = vperm.xlu0 %1253, %v324_v19  }
 0x3f8   : > { %v1267_v22 = vpop.eup %1266 }
 0x3f9   : > { %v290_v23 = vmul.f32 %v1267_v22, %v288_v17  ;;  %vm295_vm9 = vweird.f32 %v1267_v22 }
 0x3fa   : > { %vm296_vm11 = vmor %vm294_vm10, %vm295_vm9  ;;  %vm258_vm10 = vcmask 257024  }
 0x3fb   : > { %v291_v24 = vsub.f32 1.0, %v290_v23  ;;  %v1072_v23 = vld [vmem:[%s1562_s30 + $0x18] sm:$0xff] }
 0x3fd   : > { %v292_v25 = vmul.f32 %v1267_v22, %v291_v24 }
 0x3fe   : > { %407 = vperm.xlu0 %1253, %v405_v21  }
 0x3ff   : > { %v293_v26 = vadd.f32 %v1267_v22, %v292_v25 }
 0x401   : > { %v297_v30 = vsel %vm296_vm11, %v1267_v22, %v293_v26 }
 0x402   : > { %v302_v33 = vsel %vm299_vm12, %v301_v31, %v297_v30  ;;  %v486_v30 = vsel %vm485_vm4, 1, %v1409_v43 }
 0x403   : > { %v305_v36 = vmul.f32 %v302_v33, %v248_v35 }
 0x460   : > { %v308_v32 = vpop.permute.xlu0 %307 }
 0x461   : > { %v310_v34 = vmul.f32 %v308_v32, %v302_v33 }
 0x463   : > { %312 = vrot.lane.b32.xlu1 %v310_v34, %s1408_s12 }
 0x468   : > { %v327_v40 = vpop.permute.xlu0 %326 }
 0x469   : > { %vm328_vm13 = vcmp.eq.s32.totalorder %v327_v40, 1 }
 0x470   : > { %v408_v15 = vpop.permute.xlu0 %407 }
 0x471   : > { %vm409_vm3 = vcmp.eq.s32.totalorder %v408_v15, 1 }
 0x4d5   : > { %v313_v37 = vpop.permute.xlu1 %312 }
 0x4d6   : > { %v315_v38 = vadd.f32 %v313_v37, %v305_v36 }
 0x4d8   : > { %1268 = vtanh.f32 %v315_v38  ;;  %v330_v10 = vsel %vm328_vm13, %v315_v38, %v248_v35 }
 0x4de   : > { %v1269_v39 = vpop.eup %1268 }
 0x4df   : > { %318 = vrot.lane.b32.xlu2 %v1269_v39, %s1408_s12 }
 0x539   : > { %v319_v41 = vpop.permute.xlu2 %318 }
 0x53a   : > { %v321_v42 = vmul.f32 %v319_v41, %v302_v33 }
 0x53c   : > { %v329_v44 = vsel %vm328_vm13, %v321_v42, %v247_v5 }
 0x53d   : > { %v1597_v45 = vpack.c.bf16 %v329_v44, %v329_v44 }
 0x53f   : > { %v345_v46 = vunpack.c.l.b16 %v1597_v45 }
 0x541   : > { %v346_v47 = vpack.c.b16 %v345_v46, %v345_v46 }
 0x543   : > { %347 = vrot.lane.b32.xlu1 %v346_v47, %s1407_s28 }
 0x5b5   : > { %v348_v28 = vpop.permute.xlu1 %347 }
 0x5b6   : > { %1066 = vmatmul.msk.bf16.vlgmr.msra.gmra.mxu2 %vm104_vm0, %v348_v28 }
 0x639   : > { %v361_v49 = vpop.f32.mrf.mxu2 }
 0x63a   : > { %v365_v50 = vadd.f32 %v1065_v48, %v361_v49 }
 0x63c   : > { %1270 = vtanh.f32 %v365_v50  ;;  %v1067_v53 = vmul.f32 -1.442695, %v365_v50 }
 0x63e   : > { %1272 = vpow2.f32 %v1067_v53 }
 0x641   : > { %v363_v51 = vpop.f32.mrf.mxu2 }
 0x642   : > { %v1271_v52 = vpop.eup %1270 }
 0x643   : > { %388 = vrot.lane.b32.xlu2 %v1271_v52, %s1408_s12 }
 0x644   : > { %v1273_v54 = vpop.eup %1272 }
 0x645   : > { %v369_v55 = vadd.f32 1.0, %v1273_v54 }
 0x647   : > { %1274 = vrcp.f32 %v369_v55  ;;  %v381_v61 = vand.u32 2147483648, %v369_v55  ;;  %vm375_vm15 = vweird.f32 %v369_v55  ;;  %v379_v62 = vand.u32 2147483647, %v369_v55 }
 0x649   : > { %v382_v5 = vor.u32 1.1754944e-38, %v381_v61  ;;  %vm380_vm2 = vcmp.eq.f32.partialorder %v379_v62, 8.507059e+37 }
 0x64d   : > { %v1275_v56 = vpop.eup %1274 }
 0x64e   : > { %v371_v57 = vmul.f32 %v1275_v56, %v369_v55  ;;  %vm376_vm14 = vweird.f32 %v1275_v56 }
 0x64f   : > { %vm377_vm1 = vmor %vm375_vm15, %vm376_vm14 }
 0x650   : > { %v372_v58 = vsub.f32 1.0, %v371_v57 }
 0x652   : > { %v373_v59 = vmul.f32 %v1275_v56, %v372_v58 }
 0x654   : > { %v374_v60 = vadd.f32 %v1275_v56, %v373_v59 }
 0x656   : > { %v378_v63 = vsel %vm377_vm1, %v1275_v56, %v374_v60 }
 0x657   : > { %v383_v8 = vsel %vm380_vm2, %v382_v5, %v378_v63 }
 0x658   : > { %v386_v11 = vmul.f32 %v383_v8, %v330_v10 }
 0x69d   : > { %v389_v7 = vpop.permute.xlu2 %388 }
 0x69e   : > { %v391_v9 = vmul.f32 %v389_v7, %v383_v8 }
 0x6a0   : > { %393 = vrot.lane.b32.xlu1 %v391_v9, %s1408_s12 }
 0x712   : > { %v394_v12 = vpop.permute.xlu1 %393 }
 0x713   : > { %v396_v13 = vadd.f32 %v394_v12, %v386_v11 }
 0x715   : > { %1276 = vtanh.f32 %v396_v13  ;;  %v411_v47 = vsel %vm409_vm3, %v396_v13, %v330_v10 }
 0x71b   : > { %v1277_v14 = vpop.eup %1276 }
 0x71c   : > { %399 = vrot.lane.b32.xlu2 %v1277_v14, %s1408_s12 }
 0x776   : > { %v400_v16 = vpop.permute.xlu2 %399 }
 0x777   : > { %v402_v17 = vmul.f32 %v400_v16, %v383_v8 }
 0x779   : > { %v1608_v18 = vsel %vm409_vm3, %v402_v17, %v329_v44 }
 0x77a   : > { %v412_v19 = vpack.c.bf16 %v1608_v18, %v1608_v18 }
 0x77c   : > { %v426_v20 = vunpack.c.l.b16 %v412_v19 }
 0x77e   : > { %v427_v21 = vpack.c.b16 %v426_v20, %v426_v20 }
 0x780   : > { %428 = vrot.lane.b32.xlu1 %v427_v21, %s1407_s28 }
 0x7f2   : > { %v429_v22 = vpop.permute.xlu1 %428 }
 0x7f3   : > { %1073 = vmatmul.msk.bf16.vlgmr.msra.gmra.mxu3 %vm104_vm0, %v429_v22 }
 0x876   : > { %v442_v24 = vpop.f32.mrf.mxu3 }
 0x877   : > { %v446_v25 = vadd.f32 %v1072_v23, %v442_v24 }
 0x879   : > { %1278 = vtanh.f32 %v446_v25  ;;  %v1074_v31 = vmul.f32 -1.442695, %v446_v25 }
 0x87b   : > { %1280 = vpow2.f32 %v1074_v31 }
 0x87e   : > { %v444_v26 = vpop.f32.mrf.mxu3 }
 0x87f   : > { %v1279_v27 = vpop.eup %1278 }
 0x880   : > { %469 = vrot.lane.b32.xlu2 %v1279_v27, %s1408_s12 }
 0x881   : > { %v1281_v32 = vpop.eup %1280 }
 0x882   : > { %v450_v33 = vadd.f32 1.0, %v1281_v32 }
 0x884   : > { %1282 = vrcp.f32 %v450_v33  ;;  %v462_v39 = vand.u32 2147483648, %v450_v33  ;;  %vm456_vm6 = vweird.f32 %v450_v33  ;;  %v460_v40 = vand.u32 2147483647, %v450_v33 }
 0x886   : > { %v463_v41 = vor.u32 1.1754944e-38, %v462_v39  ;;  %vm461_vm8 = vcmp.eq.f32.partialorder %v460_v40, 8.507059e+37 }
 0x888   : > { %488 = vperm.xlu2 %1252, %v486_v30  }
 0x88a   : > { %v1283_v34 = vpop.eup %1282 }
 0x88b   : > { %v452_v35 = vmul.f32 %v1283_v34, %v450_v33  ;;  %vm457_vm5 = vweird.f32 %v1283_v34 }
 0x88c   : > { %vm458_vm7 = vmor %vm456_vm6, %vm457_vm5 }
 0x88d   : > { %v453_v36 = vsub.f32 1.0, %v452_v35 }
 0x88f   : > { %v454_v37 = vmul.f32 %v1283_v34, %v453_v36 }
 0x890   : > { %414 = vrot.lane.b32.xlu2 %v412_v19, %s1407_s28 }
 0x891   : > { %v455_v38 = vadd.f32 %v1283_v34, %v454_v37 }
 0x893   : > { %v459_v43 = vsel %vm458_vm7, %v1283_v34, %v455_v38 }
 0x894   : > { %v464_v44 = vsel %vm461_vm8, %v463_v41, %v459_v43 }
 0x895   : > { %v467_v48 = vmul.f32 %v464_v44, %v411_v47 }
 0x8da   : > { %v470_v42 = vpop.permute.xlu2 %469 }
 0x8db   : > { %v472_v46 = vmul.f32 %v470_v42, %v464_v44 }
 0x8dd   : > { %474 = vrot.lane.b32.xlu0 %v472_v46, %s1408_s12 }
 0x8e2   : > { %v489_v28 = vpop.permute.xlu2 %488 }
 0x8e3   : > { %vm490_vm9 = vcmp.eq.s32.totalorder %v489_v28, 1 }
 0x8e5   : > { %251 = vrot.lane.b32.xlu0 %v1579_v6, %s1407_s28 }
 0x8ea   : > { %v415_v57 = vpop.permute.xlu2 %414 }
 0x94f   : > { %v475_v49 = vpop.permute.xlu0 %474 }
 0x950   : > { %v477_v50 = vadd.f32 %v475_v49, %v467_v48 }
 0x952   : > { %1284 = vtanh.f32 %v477_v50  ;;  %v492_v51 = vsel %vm490_vm9, %v477_v50, %v411_v47  }
 0x953   : > { %v1789_v28 = vmov %v492_v51 }
 0x957   : > { %v252_v52 = vpop.permute.xlu0 %251 }
 0x958   : > { %v1285_v53 = vpop.eup %1284  ;;  %259 = vst.msk [vmem:[%s257_s18] sm:$0xf] %vm258_vm10, %v252_v52 }
 0x959   : > { %480 = vrot.lane.b32.xlu1 %v1285_v53, %s1408_s12 }
 0x961   : > { %333 = vrot.lane.b32.xlu1 %v1597_v45, %s1407_s28 }
 0x9cb   : > { %v481_v6 = vpop.permute.xlu1 %480 }
 0x9cc   : > { %v483_v54 = vmul.f32 %v481_v6, %v464_v44 }
 0x9ce   : > { %v491_v29 = vsel %vm490_vm9, %v483_v54, %v1608_v18  }
 0x9cf   : > { %v493_v55 = vpack.c.bf16 %v491_v29, %v491_v29 }
 0x9d1   : > { %495 = vrot.lane.b32.xlu0 %v493_v55, %s1407_s28 }
 0x9d3   : > { %v334_v56 = vpop.permute.xlu1 %333 }
 0x9d4   : > { %340 = vst.msk [vmem:[%s339_s3] sm:$0xf] %vm258_vm10, %v334_v56 }
 0x9d5   : > { %421 = vst.msk [vmem:[%s420_s25] sm:$0xf] %vm258_vm10, %v415_v57 }
 0xa40   :  { %163 = sbr.rel (!%p160_p1) target bundleno = 161 (0xa1), region = 90 }
 0xa43   : > { %v496_v45 = vpop.permute.xlu0 %495 }
 0xa44   : > { %502 = vst.msk [vmem:[%s501_s27] sm:$0xf] %vm258_vm10, %v496_v45 }
 0xa45 PF:  { %v1163_v58 = vld [vmem:[%s1783_s6 + $0x8] sm:$0xff]  ;;  %v1162_v59 = vld [vmem:[%s1783_s6] sm:$0xff]  ;;  %v1670_v23 = vmov 0.0   ;;  %s1680_s15 = smov (!%p1041_p0), 0  }
 0xa46   :  { %569 = vmatpush.bf16.msra.mxu0 %v1163_v58  ;;  %1180 = vmatpush.bf16.msra.mxu1 %v1163_v58  ;;  %v1659_v1 = vld [vmem:[#allocation6] sm:$0xf]  ;;  %v1661_v2 = vld [vmem:[#allocation6] sm:$0xf0]  ;;  %v1663_v3 = vld [vmem:[#allocation6 + $0x8] sm:$0xf] }
 0xa47   :  { %1181 = vmatpush.bf16.msra.mxu2 %v1163_v58  ;;  %1182 = vmatpush.bf16.msra.mxu3 %v1163_v58  ;;  %v1665_v4 = vld [vmem:[#allocation6 + $0x8] sm:$0xf0]  ;;  %v1286_v5 = vld [vmem:[%s1785_s8] ss:$0 sm:$0xff] }
 0xa4a   :  { %570 = vmatpush.bf16.msra.mxu0 %v1162_v59  ;;  %1183 = vmatpush.bf16.msra.mxu1 %v1162_v59 }
 0xa4b   :  { %v1158_v60 = vld [vmem:[#allocation3] sm:$0xff]  ;;  %v1159_v61 = vld [vmem:[#allocation3 + $0x8] sm:$0xff]  ;;  %v1160_v62 = vld [vmem:[#allocation3 + $0x10] sm:$0xff]  ;;  %1184 = vmatpush.bf16.msra.mxu2 %v1162_v59  ;;  %1185 = vmatpush.bf16.msra.mxu3 %v1162_v59 }
 0xa4c   :  { %v1161_v63 = vld [vmem:[#allocation3 + $0x18] sm:$0xff] }
 0xa4d   :  { %1100 = vmatmul.msk.bf16.vlgmr.msra.gmra.mxu0 %vm104_vm0, %v1158_v60  ;;  %1101 = vmatmul.msk.bf16.vlgmr.msra.gmra.mxu1 %vm104_vm0, %v1159_v61 }
 0xa4e   :  { %1102 = vmatmul.msk.bf16.vlgmr.msra.gmra.mxu2 %vm104_vm0, %v1160_v62  ;;  %1103 = vmatmul.msk.bf16.vlgmr.msra.gmra.mxu3 %vm104_vm0, %v1161_v63 }
 0xaca   :  { %v572_v7 = vpop.f32.mrf.mxu0  ;;  %v577_v8 = vpop.f32.mrf.mxu1 }
 0xacb   :  { %v573_v9 = vadd.f32 %v1286_v5, %v572_v7  ;;  %v578_v10 = vadd.f32 %v1286_v5, %v577_v8 }
 0xacd   :  { %592 = vst [vmem:[#allocation2] sm:$0xff] %v573_v9 }
 0xace   :  { %594 = vst [vmem:[#allocation2 + $0x10] sm:$0xff] %v578_v10 }
 0xad1   :  { %v582_v11 = vpop.f32.mrf.mxu2  ;;  %v587_v12 = vpop.f32.mrf.mxu3 }
 0xad2   :  { %v583_v13 = vadd.f32 %v1286_v5, %v582_v11  ;;  %v588_v14 = vadd.f32 %v1286_v5, %v587_v12  ;;  %v574_v15 = vpop.f32.mrf.mxu0  ;;  %v579_v16 = vpop.f32.mrf.mxu1 }
 0xad3   :  { %v575_v17 = vadd.f32 %v1286_v5, %v574_v15  ;;  %v580_v18 = vadd.f32 %v1286_v5, %v579_v16 }
 0xad4   :  { %596 = vst [vmem:[#allocation2 + $0x20] sm:$0xff] %v583_v13 }
 0xad5   :  { %598 = vst [vmem:[#allocation2 + $0x30] sm:$0xff] %v588_v14 }
 0xad6   :  { %593 = vst [vmem:[#allocation2 + $0x8] sm:$0xff] %v575_v17 }
 0xad7   :  { %595 = vst [vmem:[#allocation2 + $0x18] sm:$0xff] %v580_v18 }
 0xad9   :  { %v584_v19 = vpop.f32.mrf.mxu2  ;;  %v589_v20 = vpop.f32.mrf.mxu3  ;;  %1006 = sbr.rel (%p1041_p0) target bundleno = 5122 (0x1402), region = 95 }
 0xada   :  { %v585_v21 = vadd.f32 %v1286_v5, %v584_v19  ;;  %v590_v22 = vadd.f32 %v1286_v5, %v589_v20 }
 0xadc   :  { %597 = vst [vmem:[#allocation2 + $0x28] sm:$0xff] %v585_v21 }
 0xadd   :  { %599 = vst [vmem:[#allocation2 + $0x38] sm:$0xff] %v590_v22 }
 0xade   :  { %v1676_v24 = vmov 0.0   ;;  %v1678_v25 = vmov 0.0  }
 0xadf LB: > { %v1114_v26 = vor.u32 %v1665_v4, %v1663_v3  ;;  %v616_v27 = vpack.c.bf16 %v1394_v25, %v1394_v25  ;;  %v1110_v29 = vor.u32 %v1661_v2, %v1659_v1  ;;  %s1410_s16 = smov 64   ;;  %s1106_s17 = sshll.u32 %s1398_s15, 5  ;;  %v1412_v40 = vmov 0   ;;  %s1398_s15 = sphi %s1680_s15, %s607_s15   ;;  %v1394_v25 = vphi %v1678_v25, %v1790_v25   ;;  %v1390_v24 = vphi %v1676_v24, %v907_v24  }
 0xae0   : > { %s1700_s18 = scalar_lea.vmem [#allocation2], %s1106_s17  ;;  %s1411_s19 = smov 32   ;;  %1287 = vset.pattern.permute.xlu2 %v1412_v40  ;;  %1288 = vset.pattern.permute.xlu0 %v1412_v40 }
 0xae1   : > { %641 = vmatpush.bf16.msra.mxu0 %v1114_v26  ;;  %712 = vmatpush.bf16.msra.mxu1 %v1114_v26  ;;  %s1705_s20 = sshll.u32 %s1398_s15, 2  ;;  %s607_s15 = sadd.s32 1, %s1398_s15  }
 0xae2   : > { %783 = vmatpush.bf16.msra.mxu2 %v1114_v26  ;;  %854 = vmatpush.bf16.msra.mxu3 %v1114_v26  ;;  %v686_v39 = vstv %s1705_s20  ;;  %s695_s4 = sadd.s32 1, %s1705_s20  ;;  %s766_s21 = sadd.s32 2, %s1705_s20 }
 0xae3   : > { %618 = vrot.lane.b32.xlu0 %v616_v27, %s1410_s16  ;;  %vm687_vm11 = vcmp.gt.s32.totalorder %v1481_v0, %v686_v39  ;;  %v757_v12 = vstv %s695_s4  ;;  %v828_v14 = vstv %s766_s21  ;;  %s837_s23 = sadd.s32 3, %s1705_s20  ;;  %p606_p2 = scmp.ge.s32.totalorder %s607_s15, %s1777_s0 }
 0xae4   : > { %v615_v31 = vld [vmem:[%s1700_s18] sm:$0xff]  ;;  %v688_v43 = vsel %vm687_vm11, 1, %v1412_v40  ;;  %v1119_v62 = vld [vmem:[%s1700_s18 + $0x8] sm:$0xff]  ;;  %vm758_vm2 = vcmp.gt.s32.totalorder %v1481_v0, %v757_v12  ;;  %vm829_vm3 = vcmp.gt.s32.totalorder %v1481_v0, %v828_v14  ;;  %v1129_v12 = vld [vmem:[%s1700_s18 + $0x18] sm:$0xff] }
 0xae5   : > { %642 = vmatpush.bf16.msra.mxu0 %v1110_v29  ;;  %713 = vmatpush.bf16.msra.mxu1 %v1110_v29  ;;  %v759_v13 = vsel %vm758_vm2, 1, %v1412_v40  ;;  %v830_v15 = vsel %vm829_vm3, 1, %v1412_v40 }
 0xae6   : > { %784 = vmatpush.bf16.msra.mxu2 %v1110_v29  ;;  %855 = vmatpush.bf16.msra.mxu3 %v1110_v29 }
 0xae7   : > { %690 = vperm.xlu2 %1287, %v688_v43  }
 0xb41   : > { %v691_v57 = vpop.permute.xlu2 %690 }
 0xb42   : > { %vm692_vm1 = vcmp.eq.s32.totalorder %v691_v57, 1 }
 0xb55   : > { %v619_v30 = vpop.permute.xlu0 %618 }
 0xb56   : > { %1115 = vmatmul.msk.bf16.vlgmr.msra.gmra.mxu0 %vm104_vm0, %v619_v30 }
 0xbd3   : > { %v644_v32 = vpop.f32.mrf.mxu0 }
 0xbd4   : > { %v648_v33 = vadd.f32 %v644_v32, %v615_v31 }
 0xbd6   : > { %1289 = vtanh.f32 %v648_v33  ;;  %v1116_v36 = vmul.f32 -1.442695, %v648_v33 }
 0xbd8   : > { %1291 = vpow2.f32 %v1116_v36 }
 0xbdb   : > { %v646_v34 = vpop.f32.mrf.mxu0 }
 0xbdc   : > { %v1290_v35 = vpop.eup %1289 }
 0xbdd   : > { %671 = vrot.lane.b32.xlu0 %v1290_v35, %s1411_s19 }
 0xbde   : > { %v1292_v37 = vpop.eup %1291 }
 0xbdf   : > { %v652_v38 = vadd.f32 1.0, %v1292_v37 }
 0xbe1   : > { %1293 = vrcp.f32 %v652_v38  ;;  %v664_v28 = vand.u32 2147483648, %v652_v38  ;;  %vm658_vm13 = vweird.f32 %v652_v38  ;;  %v662_v48 = vand.u32 2147483647, %v652_v38 }
 0xbe3   : > { %v665_v50 = vor.u32 1.1754944e-38, %v664_v28  ;;  %vm663_vm15 = vcmp.eq.f32.partialorder %v662_v48, 8.507059e+37 }
 0xbe7   : > { %v1294_v41 = vpop.eup %1293 }
 0xbe8   : > { %v654_v42 = vmul.f32 %v1294_v41, %v652_v38  ;;  %vm659_vm12 = vweird.f32 %v1294_v41 }
 0xbe9   : > { %vm660_vm14 = vmor %vm658_vm13, %vm659_vm12 }
 0xbea   : > { %v655_v44 = vsub.f32 1.0, %v654_v42 }
 0xbec   : > { %v656_v46 = vmul.f32 %v1294_v41, %v655_v44 }
 0xbee   : > { %v657_v47 = vadd.f32 %v1294_v41, %v656_v46 }
 0xbf0   : > { %v661_v49 = vsel %vm660_vm14, %v1294_v41, %v657_v47 }
 0xbf1   : > { %v666_v52 = vsel %vm663_vm15, %v665_v50, %v661_v49 }
 0xbf2   : > { %v669_v6 = vmul.f32 %v1390_v24, %v666_v52 }
 0xc4f   : > { %v672_v51 = vpop.permute.xlu0 %671 }
 0xc50   : > { %v674_v53 = vmul.f32 %v672_v51, %v666_v52 }
 0xc52   : > { %676 = vrot.lane.b32.xlu1 %v674_v53, %s1411_s19 }
 0xcc4   : > { %v677_v54 = vpop.permute.xlu1 %676 }
 0xcc5   : > { %v679_v55 = vadd.f32 %v677_v54, %v669_v6 }
 0xcc7   : > { %1295 = vtanh.f32 %v679_v55  ;;  %v694_v30 = vsel %vm692_vm1, %v679_v55, %v1390_v24  ;;  %v1124_v24 = vld [vmem:[%s1700_s18 + $0x10] sm:$0xff] }
 0xccd   : > { %v1296_v56 = vpop.eup %1295 }
 0xcce   : > { %682 = vrot.lane.b32.xlu1 %v1296_v56, %s1411_s19 }
 0xd40   : > { %v683_v45 = vpop.permute.xlu1 %682 }
 0xd41   : > { %v685_v58 = vmul.f32 %v683_v45, %v666_v52 }
 0xd43   : > { %v693_v59 = vsel %vm692_vm1, %v685_v58, %v1394_v25 }
 0xd44   : > { %v699_v60 = vpack.c.bf16 %v693_v59, %v693_v59 }
 0xd46   : > { %701 = vrot.lane.b32.xlu2 %v699_v60, %s1410_s16 }
 0xda0   : > { %v702_v61 = vpop.permute.xlu2 %701 }
 0xda1   : > { %1120 = vmatmul.msk.bf16.vlgmr.msra.gmra.mxu1 %vm104_vm0, %v702_v61 }
 0xe1e   : > { %v715_v63 = vpop.f32.mrf.mxu1 }
 0xe1f   : > { %v719_v5 = vadd.f32 %v1119_v62, %v715_v63 }
 0xe21   : > { %1297 = vtanh.f32 %v719_v5  ;;  %v1121_v9 = vmul.f32 -1.442695, %v719_v5 }
 0xe23   : > { %1299 = vpow2.f32 %v1121_v9 }
 0xe26   : > { %v717_v7 = vpop.f32.mrf.mxu1 }
 0xe27   : > { %v1298_v8 = vpop.eup %1297 }
 0xe28   : > { %742 = vrot.lane.b32.xlu0 %v1298_v8, %s1411_s19 }
 0xe29   : > { %v1300_v10 = vpop.eup %1299 }
 0xe2a   : > { %v723_v11 = vadd.f32 1.0, %v1300_v10 }
 0xe2c   : > { %1301 = vrcp.f32 %v723_v11  ;;  %v735_v21 = vand.u32 2147483648, %v723_v11  ;;  %vm729_vm5 = vweird.f32 %v723_v11  ;;  %v733_v22 = vand.u32 2147483647, %v723_v11 }
 0xe2e   : > { %v736_v25 = vor.u32 1.1754944e-38, %v735_v21  ;;  %vm734_vm7 = vcmp.eq.f32.partialorder %v733_v22, 8.507059e+37 }
 0xe30   : > { %761 = vperm.xlu0 %1288, %v759_v13  }
 0xe32   : > { %v1302_v16 = vpop.eup %1301 }
 0xe33   : > { %v725_v17 = vmul.f32 %v1302_v16, %v723_v11  ;;  %vm730_vm4 = vweird.f32 %v1302_v16 }
 0xe34   : > { %vm731_vm6 = vmor %vm729_vm5, %vm730_vm4 }
 0xe35   : > { %v726_v18 = vsub.f32 1.0, %v725_v17  ;;  %v899_v17 = vstv %s837_s23 }
 0xe36   : > { %vm900_vm14 = vcmp.gt.s32.totalorder %v1481_v0, %v899_v17 }
 0xe37   : > { %v727_v19 = vmul.f32 %v1302_v16, %v726_v18  ;;  %v901_v18 = vsel %vm900_vm14, 1, %v1412_v40 }
 0xe38   : > { %832 = vperm.xlu0 %1288, %v830_v15  }
 0xe39   : > { %v728_v20 = vadd.f32 %v1302_v16, %v727_v19 }
 0xe3b   : > { %v732_v23 = vsel %vm731_vm6, %v1302_v16, %v728_v20 }
 0xe3c   : > { %v737_v27 = vsel %vm734_vm7, %v736_v25, %v732_v23 }
 0xe3d   : > { %v740_v31 = vmul.f32 %v737_v27, %v694_v30 }
 0xe9a   : > { %v743_v26 = vpop.permute.xlu0 %742 }
 0xe9b   : > { %v745_v29 = vmul.f32 %v743_v26, %v737_v27 }
 0xe9d   : > { %747 = vrot.lane.b32.xlu1 %v745_v29, %s1411_s19 }
 0xea2   : > { %v762_v35 = vpop.permute.xlu0 %761 }
 0xea3   : > { %vm763_vm8 = vcmp.eq.s32.totalorder %v762_v35, 1 }
 0xeaa   : > { %v833_v5 = vpop.permute.xlu0 %832 }
 0xeab   : > { %vm834_vm13 = vcmp.eq.s32.totalorder %v833_v5, 1 }
 0xf0f   : > { %v748_v32 = vpop.permute.xlu1 %747 }
 0xf10   : > { %v750_v33 = vadd.f32 %v748_v32, %v740_v31 }
 0xf12   : > { %1303 = vtanh.f32 %v750_v33 }
 0xf18   : > { %v1304_v34 = vpop.eup %1303 }
 0xf19   : > { %753 = vrot.lane.b32.xlu2 %v1304_v34, %s1411_s19 }
 0xf73   : > { %v754_v36 = vpop.permute.xlu2 %753 }
 0xf74   : > { %v756_v37 = vmul.f32 %v754_v36, %v737_v27 }
 0xf76   : > { %v764_v38 = vsel %vm763_vm8, %v756_v37, %v693_v59  ;;  %v765_v59 = vsel %vm763_vm8, %v750_v33, %v694_v30 }
 0xf77   : > { %v770_v39 = vpack.c.bf16 %v764_v38, %v764_v38 }
 0xf79   : > { %772 = vrot.lane.b32.xlu1 %v770_v39, %s1410_s16 }
 0xfeb   : > { %v773_v43 = vpop.permute.xlu1 %772 }
 0xfec   : > { %1125 = vmatmul.msk.bf16.vlgmr.msra.gmra.mxu2 %vm104_vm0, %v773_v43 }
0x106f   : > { %v786_v41 = vpop.f32.mrf.mxu2 }
0x1070   : > { %v790_v42 = vadd.f32 %v1124_v24, %v786_v41 }
0x1072   : > { %1305 = vtanh.f32 %v790_v42  ;;  %v1126_v47 = vmul.f32 -1.442695, %v790_v42 }
0x1074   : > { %1307 = vpow2.f32 %v1126_v47 }
0x1077   : > { %v788_v44 = vpop.f32.mrf.mxu2 }
0x1078   : > { %v1306_v46 = vpop.eup %1305 }
0x1079   : > { %813 = vrot.lane.b32.xlu2 %v1306_v46, %s1411_s19 }
0x107a   : > { %v1308_v28 = vpop.eup %1307 }
0x107b   : > { %v794_v48 = vadd.f32 1.0, %v1308_v28 }
0x107d   : > { %1309 = vrcp.f32 %v794_v48  ;;  %v806_v6 = vand.u32 2147483648, %v794_v48  ;;  %vm800_vm10 = vweird.f32 %v794_v48  ;;  %v804_v54 = vand.u32 2147483647, %v794_v48 }
0x107f   : > { %v807_v56 = vor.u32 1.1754944e-38, %v806_v6  ;;  %vm805_vm12 = vcmp.eq.f32.partialorder %v804_v54, 8.507059e+37 }
0x1083   : > { %v1310_v49 = vpop.eup %1309 }
0x1084   : > { %v796_v50 = vmul.f32 %v1310_v49, %v794_v48  ;;  %vm801_vm9 = vweird.f32 %v1310_v49 }
0x1085   : > { %vm802_vm11 = vmor %vm800_vm10, %vm801_vm9 }
0x1086   : > { %v797_v51 = vsub.f32 1.0, %v796_v50 }
0x1088   : > { %v798_v52 = vmul.f32 %v1310_v49, %v797_v51 }
0x108a   : > { %v799_v53 = vadd.f32 %v1310_v49, %v798_v52 }
0x108c   : > { %v803_v55 = vsel %vm802_vm11, %v1310_v49, %v799_v53 }
0x108d   : > { %v808_v45 = vsel %vm805_vm12, %v807_v56, %v803_v55 }
0x108e   : > { %v811_v60 = vmul.f32 %v808_v45, %v765_v59 }
0x10d3   : > { %v814_v57 = vpop.permute.xlu2 %813 }
0x10d4   : > { %v816_v58 = vmul.f32 %v814_v57, %v808_v45 }
0x10d6   : > { %818 = vrot.lane.b32.xlu1 %v816_v58, %s1411_s19 }
0x1148   : > { %v819_v61 = vpop.permute.xlu1 %818 }
0x1149   : > { %v821_v62 = vadd.f32 %v819_v61, %v811_v60 }
0x114b   : > { %1311 = vtanh.f32 %v821_v62  ;;  %v836_v35 = vsel %vm834_vm13, %v821_v62, %v765_v59 }
0x1151   : > { %v1312_v63 = vpop.eup %1311 }
0x1152   : > { %824 = vrot.lane.b32.xlu2 %v1312_v63, %s1411_s19 }
0x11ac   : > { %v825_v7 = vpop.permute.xlu2 %824 }
0x11ad   : > { %v827_v8 = vmul.f32 %v825_v7, %v808_v45 }
0x11af   : > { %v835_v9 = vsel %vm834_vm13, %v827_v8, %v764_v38 }
0x11b0   : > { %v841_v10 = vpack.c.bf16 %v835_v9, %v835_v9 }
0x11b2   : > { %843 = vrot.lane.b32.xlu1 %v841_v10, %s1410_s16 }
0x1224   : > { %v844_v11 = vpop.permute.xlu1 %843 }
0x1225   : > { %1130 = vmatmul.msk.bf16.vlgmr.msra.gmra.mxu3 %vm104_vm0, %v844_v11 }
0x12a8   : > { %v857_v13 = vpop.f32.mrf.mxu3 }
0x12a9   : > { %v861_v14 = vadd.f32 %v1129_v12, %v857_v13 }
0x12ab   : > { %1313 = vtanh.f32 %v861_v14  ;;  %v1131_v19 = vmul.f32 -1.442695, %v861_v14 }
0x12ad   : > { %1315 = vpow2.f32 %v1131_v19 }
0x12b0   : > { %v859_v15 = vpop.f32.mrf.mxu3 }
0x12b1   : > { %v1314_v16 = vpop.eup %1313 }
0x12b2   : > { %884 = vrot.lane.b32.xlu2 %v1314_v16, %s1411_s19 }
0x12b3   : > { %v1316_v20 = vpop.eup %1315 }
0x12b4   : > { %v865_v21 = vadd.f32 1.0, %v1316_v20 }
0x12b6   : > { %1317 = vrcp.f32 %v865_v21  ;;  %v877_v29 = vand.u32 2147483648, %v865_v21  ;;  %vm871_vm1 = vweird.f32 %v865_v21  ;;  %v875_v30 = vand.u32 2147483647, %v865_v21 }
0x12b8   : > { %v878_v32 = vor.u32 1.1754944e-38, %v877_v29  ;;  %vm876_vm3 = vcmp.eq.f32.partialorder %v875_v30, 8.507059e+37 }
0x12ba   : > { %903 = vperm.xlu2 %1287, %v901_v18  }
0x12bc   : > { %v1318_v22 = vpop.eup %1317 }
0x12bd   : > { %v867_v23 = vmul.f32 %v1318_v22, %v865_v21  ;;  %vm872_vm15 = vweird.f32 %v1318_v22 }
0x12be   : > { %vm873_vm2 = vmor %vm871_vm1, %vm872_vm15 }
0x12bf   : > { %v868_v25 = vsub.f32 1.0, %v867_v23 }
0x12c1   : > { %v869_v26 = vmul.f32 %v1318_v22, %v868_v25 }
0x12c3   : > { %v870_v27 = vadd.f32 %v1318_v22, %v869_v26 }
0x12c5   : > { %v874_v31 = vsel %vm873_vm2, %v1318_v22, %v870_v27 }
0x12c6   : > { %v879_v33 = vsel %vm876_vm3, %v878_v32, %v874_v31 }
0x12c7   : > { %v882_v37 = vmul.f32 %v879_v33, %v836_v35 }
0x130c   : > { %v885_v40 = vpop.permute.xlu2 %884 }
0x130d   : > { %v887_v34 = vmul.f32 %v885_v40, %v879_v33 }
0x130f   : > { %889 = vrot.lane.b32.xlu0 %v887_v34, %s1411_s19 }
0x1314   : > { %v904_v36 = vpop.permute.xlu2 %903 }
0x1315   : > { %vm905_vm4 = vcmp.eq.s32.totalorder %v904_v36, 1 }
0x1381   : > { %v890_v38 = vpop.permute.xlu0 %889 }
0x1382   : > { %v892_v39 = vadd.f32 %v890_v38, %v882_v37 }
0x1384   : > { %1319 = vtanh.f32 %v892_v39  ;;  %v907_v24 = vsel %vm905_vm4, %v892_v39, %v836_v35  }
0x138a   : > { %v1320_v43 = vpop.eup %1319 }
0x138b   : > { %895 = vrot.lane.b32.xlu1 %v1320_v43, %s1411_s19 }
0x13fd   : > { %v896_v41 = vpop.permute.xlu1 %895  ;;  %609 = sbr.rel (!%p606_p2) target bundleno = 2783 (0xadf), region = 101 }
0x13fe   : > { %v898_v42 = vmul.f32 %v896_v41, %v879_v33 }
0x1400   : > { %v906_v44 = vsel %vm905_vm4, %v898_v42, %v835_v9  }
0x1401   : > { %v1790_v25 = vmov %v906_v44  ;;  %v1791_v23 = vmov (%p606_p2), %v906_v44 }
0x1402 PF:  { %v908_v46 = vpack.c.bf16 %v1402_v23, %v1402_v23  ;;  %v1170_v47 = vld [vmem:[%s1786_s9 + $0x8] sm:$0xff]  ;;  %v1169_v28 = vld [vmem:[%s1786_s9] sm:$0xff]  ;;  %vm948_vm5 = vcmask 31744   ;;  %v1402_v23 = vphi %v1670_v23, %v1791_v23  }
0x1403   :  { %941 = vmatpush.bf16.msra.mxu0 %v1170_v47  ;;  %v1321_v0 = vld [vmem:[%s1787_s10] ss:$0 sm:$0xff] }
0x1404   :  { %918 = vrot.lane.b32.xlu0 %v908_v46, %s1405_s22 }
0x1407   :  { %942 = vmatpush.bf16.msra.mxu0 %v1169_v28 }
0x1476   :  { %v919_v48 = vpop.permute.xlu0 %918 }
0x1477   :  { %1140 = vmatmul.msk.bf16.vlgmr.msra.gmra.mxu0 %vm104_vm0, %v919_v48 }
0x14f4   :  { %v944_v1 = vpop.f32.mrf.mxu0 }
0x14f5   :  { %v945_v2 = vadd.f32 %v1321_v0, %v944_v1 }
0x14f7   :  { %949 = vst.msk [vmem:[%s1788_s11] sm:$0xff] %vm948_vm5, %v945_v2 }
0x14fc   :  { %v946_v3 = vpop.f32.mrf.mxu0 }
0x14fd   :  { %954 = vsyncpa [#allocation7], 1 }

</bundles_post_ra>
